<compile_context>
chip_gen: v6e
topology: v6e:2x2x1
jax: 0.10.0
libtpu: 0.0.40
codegen_flags: <defaults>
</compile_context>

<pallas_src>
import functools

import jax
import jax.numpy as jnp
from jax.experimental import pallas as pl
from jax.experimental.pallas import tpu as pltpu


def _round_up(x, m):
    return ((x + m - 1) // m) * m


def _softplus(x, beta=0.5, threshold=14.0):
    """PyTorch nn.Softplus(beta, threshold): (1/beta)*log(1+exp(beta*x)), linear above threshold."""
    bx = beta * x
    safe = jnp.minimum(bx, threshold)  # keep exp() off the overflow branch
    return jnp.where(bx > threshold, x, (1.0 / beta) * jnp.log1p(jnp.exp(safe)))


# ---------------------------------------------------------------------------
# Pallas kernel: whole MultiLevelInteraction forward, gridded over edge tiles.
# ---------------------------------------------------------------------------
def _mgcn_kernel(
    node_ref, edge_ref, dist_ref, src_ref, dst_ref,
    w_in_ref, b_in_ref,
    w_d1_ref, b_d1_ref, w_d2_ref, b_d2_ref,
    w_e_ref, b_e_ref,
    w_o1_ref, b_o1_ref, w_o2_ref, b_o2_ref,
    w_pe_ref, b_pe_ref,
    node_out_ref, edge_out_ref,
    h_sc, hv_sc,
):
    f32 = jnp.float32
    step = pl.program_id(0)
    n_v = h_sc.shape[0]
    t_e = edge_ref.shape[0]

    # --- first edge tile: project node feats once, zero the scatter accumulator --
    @pl.when(step == 0)
    def _():
        h_sc[...] = (jnp.dot(node_ref[...], w_in_ref[...],
                             preferred_element_type=f32) + b_in_ref[...])
        hv_sc[...] = jnp.zeros_like(hv_sc)

    # --- VEConv.update_dists : Linear -> Softplus(0.5, 14) -> Linear -------------
    d = jnp.dot(dist_ref[...], w_d1_ref[...], preferred_element_type=f32) + b_d1_ref[...]
    d = _softplus(d)
    d = jnp.dot(d, w_d2_ref[...], preferred_element_type=f32) + b_d2_ref[...]

    # --- VEConv.update_edge_feats : Linear ---------------------------------------
    e = jnp.dot(edge_ref[...], w_e_ref[...], preferred_element_type=f32) + b_e_ref[...]

    # --- gather h[src] via an in-kernel one-hot built from the index tile --------
    src_ids = src_ref[...]                                              # (tE, 1) int32
    src_oh = (jax.lax.broadcasted_iota(jnp.int32, (t_e, n_v), 1)
              == src_ids).astype(f32)                                   # (tE, V)
    h_src = jnp.dot(src_oh, h_sc[...], preferred_element_type=f32)      # (tE, F)

    # --- fused message + scatter:  hv += dst_onehot @ (h[src]*d + e) -------------
    m = h_src * d + e                                                   # (tE, F)
    dst_ids = dst_ref[...]                                              # (1, tE) int32
    dst_oh = (jax.lax.broadcasted_iota(jnp.int32, (n_v, t_e), 0)
              == dst_ids).astype(f32)                                   # (V, tE)
    hv_sc[...] += jnp.dot(dst_oh, m, preferred_element_type=f32)

    # --- project_edge_feats : Linear -> Softplus (per edge tile) -----------------
    eo = jnp.dot(e, w_pe_ref[...], preferred_element_type=f32) + b_pe_ref[...]
    edge_out_ref[...] = _softplus(eo)

    # --- last edge tile: project_out_node_feats + residual -----------------------
    @pl.when(step == pl.num_programs(0) - 1)
    def _():
        nh = jnp.dot(hv_sc[...], w_o1_ref[...], preferred_element_type=f32) + b_o1_ref[...]
        nh = _softplus(nh)
        nh = jnp.dot(nh, w_o2_ref[...], preferred_element_type=f32) + b_o2_ref[...]
        node_out_ref[...] = node_ref[...] + nh


# ---------------------------------------------------------------------------
# Wrapper: lane-dense padding, tiling over edges, pallas_call plumbing.
# ---------------------------------------------------------------------------
@functools.partial(jax.jit, static_argnames=("edge_tile",))
def multi_level_interaction(node_feats, edge_feats, expanded_dists, src, dst,
                            params, *, edge_tile=256):
    assert edge_tile % 128 == 0, "edge_tile must be a multiple of 128"

    V, F = node_feats.shape
    E = edge_feats.shape[0]
    D = expanded_dists.shape[1]

    f32 = jnp.float32
    Fp = _round_up(F, 128)          # lane-dense feature dim
    Dp = _round_up(D, 128)
    Vp = _round_up(V, 8)
    tE = edge_tile
    Ep = _round_up(E, tE)
    n_tiles = Ep // tE

    def pad2(a, rows, cols):
        return jnp.pad(a.astype(f32), ((0, rows - a.shape[0]), (0, cols - a.shape[1])))

    node_p = pad2(node_feats, Vp, Fp)
    edge_p = pad2(edge_feats, Ep, Fp)
    dist_p = pad2(expanded_dists, Ep, Dp)
    # Padded edges: src -> 0 (harmless gather), dst -> Vp (out of range => scatters nothing).
    src_p = jnp.pad(src.astype(jnp.int32), (0, Ep - E)).reshape(Ep, 1)
    dst_p = jnp.pad(dst.astype(jnp.int32), (0, Ep - E), constant_values=Vp).reshape(1, Ep)

    p = {
        "w_in": pad2(params["w_in"], Fp, Fp), "b_in": pad2(params["b_in"], 1, Fp),
        "w_d1": pad2(params["w_d1"], Dp, Fp), "b_d1": pad2(params["b_d1"], 1, Fp),
        "w_d2": pad2(params["w_d2"], Fp, Fp), "b_d2": pad2(params["b_d2"], 1, Fp),
        "w_e":  pad2(params["w_e"],  Fp, Fp), "b_e":  pad2(params["b_e"],  1, Fp),
        "w_o1": pad2(params["w_o1"], Fp, Fp), "b_o1": pad2(params["b_o1"], 1, Fp),
        "w_o2": pad2(params["w_o2"], Fp, Fp), "b_o2": pad2(params["b_o2"], 1, Fp),
        "w_pe": pad2(params["w_pe"], Fp, Fp), "b_pe": pad2(params["b_pe"], 1, Fp),
    }

    # Whole-array VMEM-resident blocks (constant index_map => fetched once, not per tile).
    def whole(shape):
        return pl.BlockSpec(shape, lambda i: (0, 0))

    in_specs = [
        whole((Vp, Fp)),                                  # node feats (resident)
        pl.BlockSpec((tE, Fp), lambda i: (i, 0)),         # edge feats tile
        pl.BlockSpec((tE, Dp), lambda i: (i, 0)),         # expanded dists tile
        pl.BlockSpec((tE, 1), lambda i: (i, 0)),          # src ids tile
        pl.BlockSpec((1, tE), lambda i: (0, i)),          # dst ids tile
        whole((Fp, Fp)), whole((1, Fp)),                  # project_in_node_feats
        whole((Dp, Fp)), whole((1, Fp)),                  # update_dists[0]
        whole((Fp, Fp)), whole((1, Fp)),                  # update_dists[2]
        whole((Fp, Fp)), whole((1, Fp)),                  # update_edge_feats
        whole((Fp, Fp)), whole((1, Fp)),                  # project_out_node_feats[0]
        whole((Fp, Fp)), whole((1, Fp)),                  # project_out_node_feats[2]
        whole((Fp, Fp)), whole((1, Fp)),                  # project_edge_feats[0]
    ]
    out_specs = (
        pl.BlockSpec((Vp, Fp), lambda i: (0, 0)),         # node out (written on last step)
        pl.BlockSpec((tE, Fp), lambda i: (i, 0)),         # edge out tile
    )

    grid_spec = pltpu.PrefetchScalarGridSpec(
        num_scalar_prefetch=0,
        grid=(n_tiles,),
        in_specs=in_specs,
        out_specs=out_specs,
        scratch_shapes=[pltpu.VMEM((Vp, Fp), f32),        # h = project_in(node)
                        pltpu.VMEM((Vp, Fp), f32)],       # hv scatter accumulator
    )

    node_out, edge_out = pl.pallas_call(
        _mgcn_kernel,
        out_shape=(jax.ShapeDtypeStruct((Vp, Fp), f32),
                   jax.ShapeDtypeStruct((Ep, Fp), f32)),
        grid_spec=grid_spec,
        input_output_aliases={0: 0},                      # residual written in place
        compiler_params=pltpu.CompilerParams(
            dimension_semantics=("arbitrary",),           # edge axis is a reduction
            vmem_limit_bytes=32 * 1024 * 1024),
    )(node_p, edge_p, dist_p, src_p, dst_p,
      p["w_in"], p["b_in"], p["w_d1"], p["b_d1"], p["w_d2"], p["b_d2"],
      p["w_e"], p["b_e"], p["w_o1"], p["b_o1"], p["w_o2"], p["b_o2"],
      p["w_pe"], p["b_pe"])

    return node_out[:V, :F], edge_out[:E, :F]


# ---------------------------------------------------------------------------
# Deterministic parameter init (PyTorch Linear-style uniform bounds), stored
# as (in, out) so the kernel does x @ W + b.
# ---------------------------------------------------------------------------
def init_params(key, feats, dist_feats):
    def linear(key, fan_in, fan_out):
        kw, kb = jax.random.split(key)
        bound = 1.0 / jnp.sqrt(fan_in)
        w = jax.random.uniform(kw, (fan_in, fan_out), jnp.float32, -bound, bound)
        b = jax.random.uniform(kb, (1, fan_out), jnp.float32, -bound, bound)
        return w, b

    keys = jax.random.split(key, 7)
    p = {}
    p["w_in"], p["b_in"] = linear(keys[0], feats, feats)          # project_in_node_feats
    p["w_d1"], p["b_d1"] = linear(keys[1], dist_feats, feats)     # VEConv.update_dists[0]
    p["w_d2"], p["b_d2"] = linear(keys[2], feats, feats)          # VEConv.update_dists[2]
    p["w_e"], p["b_e"] = linear(keys[3], feats, feats)            # VEConv.update_edge_feats
    p["w_o1"], p["b_o1"] = linear(keys[4], feats, feats)          # project_out_node_feats[0]
    p["w_o2"], p["b_o2"] = linear(keys[5], feats, feats)          # project_out_node_feats[2]
    p["w_pe"], p["b_pe"] = linear(keys[6], feats, feats)          # project_edge_feats[0]
    return p


# ---------------------------------------------------------------------------
# Pure-JAX reference (same math, no Pallas) for a correctness sanity check.
# ---------------------------------------------------------------------------
def reference(node_feats, edge_feats, expanded_dists, src, dst, params):
    V = node_feats.shape[0]
    h = node_feats @ params["w_in"] + params["b_in"]
    d = expanded_dists @ params["w_d1"] + params["b_d1"]
    d = _softplus(d)
    d = d @ params["w_d2"] + params["b_d2"]
    e = edge_feats @ params["w_e"] + params["b_e"]
    m = h[src] * d + e
    hv = jnp.zeros((V, h.shape[1]), jnp.float32).at[dst].add(m)
    nh = hv @ params["w_o1"] + params["b_o1"]
    nh = _softplus(nh)
    nh = nh @ params["w_o2"] + params["b_o2"]
    node_out = node_feats + nh
    edge_out = _softplus(e @ params["w_pe"] + params["b_pe"])
    return node_out, edge_out


if __name__ == "__main__":
    # Small shapes; V and E deliberately not lane/tile aligned to exercise padding,
    # edge_tile=128 so the grid has >1 step (exercises init / accumulate / finalize).
    V, E, feats, dist_feats = 13, 240, 32, 64

    key = jax.random.PRNGKey(0)
    k_node, k_edge, k_dist, k_src, k_dst, k_params = jax.random.split(key, 6)

    node_feats = jax.random.normal(k_node, (V, feats), jnp.float32)
    edge_feats = jax.random.normal(k_edge, (E, feats), jnp.float32)
    expanded_dists = jax.random.normal(k_dist, (E, dist_feats), jnp.float32)

    # Random small directed graph: E edges over V nodes.
    src = jax.random.randint(k_src, (E,), 0, V)
    dst = jax.random.randint(k_dst, (E,), 0, V)

    params = init_params(k_params, feats, dist_feats)

    node_out, edge_out = multi_level_interaction(
        node_feats, edge_feats, expanded_dists, src, dst, params, edge_tile=128)
    jax.block_until_ready((node_out, edge_out))

    ref_node, ref_edge = reference(node_feats, edge_feats, expanded_dists, src, dst, params)
    assert node_out.shape == (V, feats) and edge_out.shape == (E, feats)
    assert jnp.allclose(node_out, ref_node, atol=1e-4, rtol=1e-4), \
        float(jnp.max(jnp.abs(node_out - ref_node)))
    assert jnp.allclose(edge_out, ref_edge, atol=1e-4, rtol=1e-4), \
        float(jnp.max(jnp.abs(edge_out - ref_edge)))

    print("KERNEL_OK")
</pallas_src>

<mosaic_0001>
module attributes {stable_mosaic.version = 11 : i64} {
  func.func @_mgcn_kernel(%arg0: i32, %arg1: memref<16x128xf32, #tpu.memory_space<vmem>>, %arg2: memref<128x128xf32, #tpu.memory_space<vmem>>, %arg3: memref<128x128xf32, #tpu.memory_space<vmem>>, %arg4: memref<128x1xi32, #tpu.memory_space<vmem>>, %arg5: memref<1x128xi32, #tpu.memory_space<vmem>>, %arg6: memref<128x128xf32, #tpu.memory_space<vmem>>, %arg7: memref<1x128xf32, #tpu.memory_space<vmem>>, %arg8: memref<128x128xf32, #tpu.memory_space<vmem>>, %arg9: memref<1x128xf32, #tpu.memory_space<vmem>>, %arg10: memref<128x128xf32, #tpu.memory_space<vmem>>, %arg11: memref<1x128xf32, #tpu.memory_space<vmem>>, %arg12: memref<128x128xf32, #tpu.memory_space<vmem>>, %arg13: memref<1x128xf32, #tpu.memory_space<vmem>>, %arg14: memref<128x128xf32, #tpu.memory_space<vmem>>, %arg15: memref<1x128xf32, #tpu.memory_space<vmem>>, %arg16: memref<128x128xf32, #tpu.memory_space<vmem>>, %arg17: memref<1x128xf32, #tpu.memory_space<vmem>>, %arg18: memref<128x128xf32, #tpu.memory_space<vmem>>, %arg19: memref<1x128xf32, #tpu.memory_space<vmem>>, %arg20: memref<16x128xf32, #tpu.memory_space<vmem>>, %arg21: memref<128x128xf32, #tpu.memory_space<vmem>>, %arg22: memref<16x128xf32, #tpu.memory_space<vmem>>, %arg23: memref<16x128xf32, #tpu.memory_space<vmem>>) attributes {dimension_semantics = [#tpu.dimension_semantics<arbitrary>], iteration_bounds = array<i64: 2>, scalar_prefetch = 0 : i64, scratch_operands = 2 : i64, tpu.core_type = #tpu.core_type<tc>, window_params = [{pipeline_mode = #tpu.pipeline_mode<synchronous>, transform_indices = @transform_0, window_bounds = array<i64: 16, 128>}, {transform_indices = @transform_1, window_bounds = array<i64: 128, 128>}, {transform_indices = @transform_2, window_bounds = array<i64: 128, 128>}, {transform_indices = @transform_3, window_bounds = array<i64: 128, 1>}, {transform_indices = @transform_4, window_bounds = array<i64: 1, 128>}, {pipeline_mode = #tpu.pipeline_mode<synchronous>, transform_indices = @transform_5, window_bounds = array<i64: 128, 128>}, {pipeline_mode = #tpu.pipeline_mode<synchronous>, transform_indices = @transform_6, window_bounds = array<i64: 1, 128>}, {pipeline_mode = #tpu.pipeline_mode<synchronous>, transform_indices = @transform_7, window_bounds = array<i64: 128, 128>}, {pipeline_mode = #tpu.pipeline_mode<synchronous>, transform_indices = @transform_8, window_bounds = array<i64: 1, 128>}, {pipeline_mode = #tpu.pipeline_mode<synchronous>, transform_indices = @transform_9, window_bounds = array<i64: 128, 128>}, {pipeline_mode = #tpu.pipeline_mode<synchronous>, transform_indices = @transform_10, window_bounds = array<i64: 1, 128>}, {pipeline_mode = #tpu.pipeline_mode<synchronous>, transform_indices = @transform_11, window_bounds = array<i64: 128, 128>}, {pipeline_mode = #tpu.pipeline_mode<synchronous>, transform_indices = @transform_12, window_bounds = array<i64: 1, 128>}, {pipeline_mode = #tpu.pipeline_mode<synchronous>, transform_indices = @transform_13, window_bounds = array<i64: 128, 128>}, {pipeline_mode = #tpu.pipeline_mode<synchronous>, transform_indices = @transform_14, window_bounds = array<i64: 1, 128>}, {pipeline_mode = #tpu.pipeline_mode<synchronous>, transform_indices = @transform_15, window_bounds = array<i64: 128, 128>}, {pipeline_mode = #tpu.pipeline_mode<synchronous>, transform_indices = @transform_16, window_bounds = array<i64: 1, 128>}, {pipeline_mode = #tpu.pipeline_mode<synchronous>, transform_indices = @transform_17, window_bounds = array<i64: 128, 128>}, {pipeline_mode = #tpu.pipeline_mode<synchronous>, transform_indices = @transform_18, window_bounds = array<i64: 1, 128>}, {pipeline_mode = #tpu.pipeline_mode<synchronous>, transform_indices = @transform_19, window_bounds = array<i64: 16, 128>}, {transform_indices = @transform_20, window_bounds = array<i64: 128, 128>}]} {
    %c0_i32 = arith.constant 0 : i32
    %0 = arith.cmpi eq, %arg0, %c0_i32 : i32
    %1 = arith.extui %0 : i1 to i32
    %c0_i32_0 = arith.constant 0 : i32
    %2 = arith.cmpi ne, %1, %c0_i32_0 : i32
    scf.if %2 {
      %c0_46 = arith.constant 0 : index
      %c0_47 = arith.constant 0 : index
      %71 = vector.load %arg1[%c0_46, %c0_47] : memref<16x128xf32, #tpu.memory_space<vmem>>, vector<16x128xf32>
      %c0_48 = arith.constant 0 : index
      %c0_49 = arith.constant 0 : index
      %72 = vector.load %arg6[%c0_48, %c0_49] : memref<128x128xf32, #tpu.memory_space<vmem>>, vector<128x128xf32>
      %cst_50 = arith.constant dense<0.000000e+00> : vector<16x128xf32>
      %73 = tpu.matmul %71, %72, %cst_50 {dimension_numbers = #tpu.dot_dimension_numbers<[1], [0], [0], [1], [0, 0, 1, 1], [], []>} : vector<16x128xf32>, vector<128x128xf32>, vector<16x128xf32> -> vector<16x128xf32>
      %c0_51 = arith.constant 0 : index
      %c0_52 = arith.constant 0 : index
      %74 = vector.load %arg7[%c0_51, %c0_52] : memref<1x128xf32, #tpu.memory_space<vmem>>, vector<1x128xf32>
      %75 = vector.broadcast %74 : vector<1x128xf32> to vector<16x128xf32>
      %76 = arith.addf %73, %75 : vector<16x128xf32>
      %c0_53 = arith.constant 0 : index
      %c0_54 = arith.constant 0 : index
      %77 = vector.load %arg22[%c0_53, %c0_54] : memref<16x128xf32, #tpu.memory_space<vmem>>, vector<16x128xf32>
      tpu.vector_store %arg22[%c0_53, %c0_54], %76 {strides = array<i32>} : memref<16x128xf32, #tpu.memory_space<vmem>>, vector<16x128xf32>,
      %cst_55 = arith.constant 0.000000e+00 : f32
      %78 = vector.broadcast %cst_55 : f32 to vector<16x128xf32>
      %c0_56 = arith.constant 0 : index
      %c0_57 = arith.constant 0 : index
      %79 = vector.load %arg23[%c0_56, %c0_57] : memref<16x128xf32, #tpu.memory_space<vmem>>, vector<16x128xf32>
      tpu.vector_store %arg23[%c0_56, %c0_57], %78 {strides = array<i32>} : memref<16x128xf32, #tpu.memory_space<vmem>>, vector<16x128xf32>,
    } else {
    }
    %c0 = arith.constant 0 : index
    %c0_1 = arith.constant 0 : index
    %3 = vector.load %arg3[%c0, %c0_1] : memref<128x128xf32, #tpu.memory_space<vmem>>, vector<128x128xf32>
    %c0_2 = arith.constant 0 : index
    %c0_3 = arith.constant 0 : index
    %4 = vector.load %arg8[%c0_2, %c0_3] : memref<128x128xf32, #tpu.memory_space<vmem>>, vector<128x128xf32>
    %cst = arith.constant dense<0.000000e+00> : vector<128x128xf32>
    %5 = tpu.matmul %3, %4, %cst {dimension_numbers = #tpu.dot_dimension_numbers<[1], [0], [0], [1], [0, 0, 1, 1], [], []>} : vector<128x128xf32>, vector<128x128xf32>, vector<128x128xf32> -> vector<128x128xf32>
    %c0_4 = arith.constant 0 : index
    %c0_5 = arith.constant 0 : index
    %6 = vector.load %arg9[%c0_4, %c0_5] : memref<1x128xf32, #tpu.memory_space<vmem>>, vector<1x128xf32>
    %7 = vector.broadcast %6 : vector<1x128xf32> to vector<128x128xf32>
    %8 = arith.addf %5, %7 : vector<128x128xf32>
    %cst_6 = arith.constant 5.000000e-01 : f32
    %9 = vector.broadcast %cst_6 : f32 to vector<128x128xf32>
    %10 = arith.mulf %9, %8 : vector<128x128xf32>
    %cst_7 = arith.constant 1.400000e+01 : f32
    %11 = vector.broadcast %cst_7 : f32 to vector<128x128xf32>
    %12 = arith.minimumf %10, %11 : vector<128x128xf32>
    %cst_8 = arith.constant 1.400000e+01 : f32
    %13 = vector.broadcast %cst_8 : f32 to vector<128x128xf32>
    %14 = arith.cmpf ogt, %10, %13 : vector<128x128xf32>
    %15 = math.exp %12 : vector<128x128xf32>
    %16 = math.log1p %15 : vector<128x128xf32>
    %cst_9 = arith.constant 2.000000e+00 : f32
    %17 = vector.broadcast %cst_9 : f32 to vector<128x128xf32>
    %18 = arith.mulf %17, %16 : vector<128x128xf32>
    %19 = arith.select %14, %8, %18 : vector<128x128xi1>, vector<128x128xf32>
    %c0_10 = arith.constant 0 : index
    %c0_11 = arith.constant 0 : index
    %20 = vector.load %arg10[%c0_10, %c0_11] : memref<128x128xf32, #tpu.memory_space<vmem>>, vector<128x128xf32>
    %cst_12 = arith.constant dense<0.000000e+00> : vector<128x128xf32>
    %21 = tpu.matmul %19, %20, %cst_12 {dimension_numbers = #tpu.dot_dimension_numbers<[1], [0], [0], [1], [0, 0, 1, 1], [], []>} : vector<128x128xf32>, vector<128x128xf32>, vector<128x128xf32> -> vector<128x128xf32>
    %c0_13 = arith.constant 0 : index
    %c0_14 = arith.constant 0 : index
    %22 = vector.load %arg11[%c0_13, %c0_14] : memref<1x128xf32, #tpu.memory_space<vmem>>, vector<1x128xf32>
    %23 = vector.broadcast %22 : vector<1x128xf32> to vector<128x128xf32>
    %24 = arith.addf %21, %23 : vector<128x128xf32>
    %c0_15 = arith.constant 0 : index
    %c0_16 = arith.constant 0 : index
    %25 = vector.load %arg2[%c0_15, %c0_16] : memref<128x128xf32, #tpu.memory_space<vmem>>, vector<128x128xf32>
    %c0_17 = arith.constant 0 : index
    %c0_18 = arith.constant 0 : index
    %26 = vector.load %arg12[%c0_17, %c0_18] : memref<128x128xf32, #tpu.memory_space<vmem>>, vector<128x128xf32>
    %cst_19 = arith.constant dense<0.000000e+00> : vector<128x128xf32>
    %27 = tpu.matmul %25, %26, %cst_19 {dimension_numbers = #tpu.dot_dimension_numbers<[1], [0], [0], [1], [0, 0, 1, 1], [], []>} : vector<128x128xf32>, vector<128x128xf32>, vector<128x128xf32> -> vector<128x128xf32>
    %c0_20 = arith.constant 0 : index
    %c0_21 = arith.constant 0 : index
    %28 = vector.load %arg13[%c0_20, %c0_21] : memref<1x128xf32, #tpu.memory_space<vmem>>, vector<1x128xf32>
    %29 = vector.broadcast %28 : vector<1x128xf32> to vector<128x128xf32>
    %30 = arith.addf %27, %29 : vector<128x128xf32>
    %c0_22 = arith.constant 0 : index
    %c0_23 = arith.constant 0 : index
    %31 = vector.load %arg4[%c0_22, %c0_23] : memref<128x1xi32, #tpu.memory_space<vmem>>, vector<128x1xi32>
    %32 = tpu.iota {dimensions = array<i32: 1>} : vector<128x16xi32>
    %33 = vector.broadcast %31 : vector<128x1xi32> to vector<128x16xi32>
    %34 = arith.cmpi eq, %32, %33 : vector<128x16xi32>
    %35 = arith.extui %34 : vector<128x16xi1> to vector<128x16xi32>
    %36 = arith.sitofp %35 : vector<128x16xi32> to vector<128x16xf32>
    %c0_24 = arith.constant 0 : index
    %c0_25 = arith.constant 0 : index
    %37 = vector.load %arg22[%c0_24, %c0_25] : memref<16x128xf32, #tpu.memory_space<vmem>>, vector<16x128xf32>
    %cst_26 = arith.constant dense<0.000000e+00> : vector<128x128xf32>
    %38 = tpu.matmul %36, %37, %cst_26 {dimension_numbers = #tpu.dot_dimension_numbers<[1], [0], [0], [1], [0, 0, 1, 1], [], []>} : vector<128x16xf32>, vector<16x128xf32>, vector<128x128xf32> -> vector<128x128xf32>
    %39 = arith.mulf %38, %24 : vector<128x128xf32>
    %40 = arith.addf %39, %30 : vector<128x128xf32>
    %c0_27 = arith.constant 0 : index
    %c0_28 = arith.constant 0 : index
    %41 = vector.load %arg5[%c0_27, %c0_28] : memref<1x128xi32, #tpu.memory_space<vmem>>, vector<1x128xi32>
    %42 = tpu.iota {dimensions = array<i32: 0>} : vector<16x128xi32>
    %43 = vector.broadcast %41 : vector<1x128xi32> to vector<16x128xi32>
    %44 = arith.cmpi eq, %42, %43 : vector<16x128xi32>
    %45 = arith.extui %44 : vector<16x128xi1> to vector<16x128xi32>
    %46 = arith.sitofp %45 : vector<16x128xi32> to vector<16x128xf32>
    %c0_29 = arith.constant 0 : index
    %c0_30 = arith.constant 0 : index
    %47 = vector.load %arg23[%c0_29, %c0_30] : memref<16x128xf32, #tpu.memory_space<vmem>>, vector<16x128xf32>
    %cst_31 = arith.constant dense<0.000000e+00> : vector<16x128xf32>
    %48 = tpu.matmul %46, %40, %cst_31 {dimension_numbers = #tpu.dot_dimension_numbers<[1], [0], [0], [1], [0, 0, 1, 1], [], []>} : vector<16x128xf32>, vector<128x128xf32>, vector<16x128xf32> -> vector<16x128xf32>
    %49 = arith.addf %47, %48 : vector<16x128xf32>
    %c0_32 = arith.constant 0 : index
    %c0_33 = arith.constant 0 : index
    %50 = vector.load %arg23[%c0_32, %c0_33] : memref<16x128xf32, #tpu.memory_space<vmem>>, vector<16x128xf32>
    tpu.vector_store %arg23[%c0_32, %c0_33], %49 {strides = array<i32>} : memref<16x128xf32, #tpu.memory_space<vmem>>, vector<16x128xf32>,
    %c0_34 = arith.constant 0 : index
    %c0_35 = arith.constant 0 : index
    %51 = vector.load %arg18[%c0_34, %c0_35] : memref<128x128xf32, #tpu.memory_space<vmem>>, vector<128x128xf32>
    %cst_36 = arith.constant dense<0.000000e+00> : vector<128x128xf32>
    %52 = tpu.matmul %30, %51, %cst_36 {dimension_numbers = #tpu.dot_dimension_numbers<[1], [0], [0], [1], [0, 0, 1, 1], [], []>} : vector<128x128xf32>, vector<128x128xf32>, vector<128x128xf32> -> vector<128x128xf32>
    %c0_37 = arith.constant 0 : index
    %c0_38 = arith.constant 0 : index
    %53 = vector.load %arg19[%c0_37, %c0_38] : memref<1x128xf32, #tpu.memory_space<vmem>>, vector<1x128xf32>
    %54 = vector.broadcast %53 : vector<1x128xf32> to vector<128x128xf32>
    %55 = arith.addf %52, %54 : vector<128x128xf32>
    %cst_39 = arith.constant 5.000000e-01 : f32
    %56 = vector.broadcast %cst_39 : f32 to vector<128x128xf32>
    %57 = arith.mulf %56, %55 : vector<128x128xf32>
    %cst_40 = arith.constant 1.400000e+01 : f32
    %58 = vector.broadcast %cst_40 : f32 to vector<128x128xf32>
    %59 = arith.minimumf %57, %58 : vector<128x128xf32>
    %cst_41 = arith.constant 1.400000e+01 : f32
    %60 = vector.broadcast %cst_41 : f32 to vector<128x128xf32>
    %61 = arith.cmpf ogt, %57, %60 : vector<128x128xf32>
    %62 = math.exp %59 : vector<128x128xf32>
    %63 = math.log1p %62 : vector<128x128xf32>
    %cst_42 = arith.constant 2.000000e+00 : f32
    %64 = vector.broadcast %cst_42 : f32 to vector<128x128xf32>
    %65 = arith.mulf %64, %63 : vector<128x128xf32>
    %66 = arith.select %61, %55, %65 : vector<128x128xi1>, vector<128x128xf32>
    %c0_43 = arith.constant 0 : index
    %c0_44 = arith.constant 0 : index
    %67 = vector.load %arg21[%c0_43, %c0_44] : memref<128x128xf32, #tpu.memory_space<vmem>>, vector<128x128xf32>
    tpu.vector_store %arg21[%c0_43, %c0_44], %66 {strides = array<i32>} : memref<128x128xf32, #tpu.memory_space<vmem>>, vector<128x128xf32>,
    %c1_i32 = arith.constant 1 : i32
    %68 = arith.cmpi eq, %arg0, %c1_i32 : i32
    %69 = arith.extui %68 : i1 to i32
    %c0_i32_45 = arith.constant 0 : i32
    %70 = arith.cmpi ne, %69, %c0_i32_45 : i32
    scf.if %70 {
      %c0_46 = arith.constant 0 : index
      %c0_47 = arith.constant 0 : index
      %71 = vector.load %arg23[%c0_46, %c0_47] : memref<16x128xf32, #tpu.memory_space<vmem>>, vector<16x128xf32>
      %c0_48 = arith.constant 0 : index
      %c0_49 = arith.constant 0 : index
      %72 = vector.load %arg14[%c0_48, %c0_49] : memref<128x128xf32, #tpu.memory_space<vmem>>, vector<128x128xf32>
      %cst_50 = arith.constant dense<0.000000e+00> : vector<16x128xf32>
      %73 = tpu.matmul %71, %72, %cst_50 {dimension_numbers = #tpu.dot_dimension_numbers<[1], [0], [0], [1], [0, 0, 1, 1], [], []>} : vector<16x128xf32>, vector<128x128xf32>, vector<16x128xf32> -> vector<16x128xf32>
      %c0_51 = arith.constant 0 : index
      %c0_52 = arith.constant 0 : index
      %74 = vector.load %arg15[%c0_51, %c0_52] : memref<1x128xf32, #tpu.memory_space<vmem>>, vector<1x128xf32>
      %75 = vector.broadcast %74 : vector<1x128xf32> to vector<16x128xf32>
      %76 = arith.addf %73, %75 : vector<16x128xf32>
      %cst_53 = arith.constant 5.000000e-01 : f32
      %77 = vector.broadcast %cst_53 : f32 to vector<16x128xf32>
      %78 = arith.mulf %77, %76 : vector<16x128xf32>
      %cst_54 = arith.constant 1.400000e+01 : f32
      %79 = vector.broadcast %cst_54 : f32 to vector<16x128xf32>
      %80 = arith.minimumf %78, %79 : vector<16x128xf32>
      %cst_55 = arith.constant 1.400000e+01 : f32
      %81 = vector.broadcast %cst_55 : f32 to vector<16x128xf32>
      %82 = arith.cmpf ogt, %78, %81 : vector<16x128xf32>
      %83 = math.exp %80 : vector<16x128xf32>
      %84 = math.log1p %83 : vector<16x128xf32>
      %cst_56 = arith.constant 2.000000e+00 : f32
      %85 = vector.broadcast %cst_56 : f32 to vector<16x128xf32>
      %86 = arith.mulf %85, %84 : vector<16x128xf32>
      %87 = arith.select %82, %76, %86 : vector<16x128xi1>, vector<16x128xf32>
      %c0_57 = arith.constant 0 : index
      %c0_58 = arith.constant 0 : index
      %88 = vector.load %arg16[%c0_57, %c0_58] : memref<128x128xf32, #tpu.memory_space<vmem>>, vector<128x128xf32>
      %cst_59 = arith.constant dense<0.000000e+00> : vector<16x128xf32>
      %89 = tpu.matmul %87, %88, %cst_59 {dimension_numbers = #tpu.dot_dimension_numbers<[1], [0], [0], [1], [0, 0, 1, 1], [], []>} : vector<16x128xf32>, vector<128x128xf32>, vector<16x128xf32> -> vector<16x128xf32>
      %c0_60 = arith.constant 0 : index
      %c0_61 = arith.constant 0 : index
      %90 = vector.load %arg17[%c0_60, %c0_61] : memref<1x128xf32, #tpu.memory_space<vmem>>, vector<1x128xf32>
      %91 = vector.broadcast %90 : vector<1x128xf32> to vector<16x128xf32>
      %92 = arith.addf %89, %91 : vector<16x128xf32>
      %c0_62 = arith.constant 0 : index
      %c0_63 = arith.constant 0 : index
      %93 = vector.load %arg1[%c0_62, %c0_63] : memref<16x128xf32, #tpu.memory_space<vmem>>, vector<16x128xf32>
      %94 = arith.addf %93, %92 : vector<16x128xf32>
      %c0_64 = arith.constant 0 : index
      %c0_65 = arith.constant 0 : index
      %95 = vector.load %arg20[%c0_64, %c0_65] : memref<16x128xf32, #tpu.memory_space<vmem>>, vector<16x128xf32>
      tpu.vector_store %arg20[%c0_64, %c0_65], %94 {strides = array<i32>} : memref<16x128xf32, #tpu.memory_space<vmem>>, vector<16x128xf32>,
    } else {
    }
    return
  }
  func.func @transform_0(%arg0: i32) -> (i32, i32) {
    %c0_i32 = arith.constant 0 : i32
    %c0_i32_0 = arith.constant 0 : i32
    %c0_i32_1 = arith.constant 0 : i32
    return %c0_i32, %c0_i32_0 : i32, i32
  }
  func.func @transform_1(%arg0: i32) -> (i32, i32) {
    %c0_i32 = arith.constant 0 : i32
    %c0_i32_0 = arith.constant 0 : i32
    return %arg0, %c0_i32 : i32, i32
  }
  func.func @transform_2(%arg0: i32) -> (i32, i32) {
    %c0_i32 = arith.constant 0 : i32
    %c0_i32_0 = arith.constant 0 : i32
    return %arg0, %c0_i32 : i32, i32
  }
  func.func @transform_3(%arg0: i32) -> (i32, i32) {
    %c0_i32 = arith.constant 0 : i32
    %c0_i32_0 = arith.constant 0 : i32
    return %arg0, %c0_i32 : i32, i32
  }
  func.func @transform_4(%arg0: i32) -> (i32, i32) {
    %c0_i32 = arith.constant 0 : i32
    %c0_i32_0 = arith.constant 0 : i32
    return %c0_i32, %arg0 : i32, i32
  }
  func.func @transform_5(%arg0: i32) -> (i32, i32) {
    %c0_i32 = arith.constant 0 : i32
    %c0_i32_0 = arith.constant 0 : i32
    %c0_i32_1 = arith.constant 0 : i32
    return %c0_i32, %c0_i32_0 : i32, i32
  }
  func.func @transform_6(%arg0: i32) -> (i32, i32) {
    %c0_i32 = arith.constant 0 : i32
    %c0_i32_0 = arith.constant 0 : i32
    %c0_i32_1 = arith.constant 0 : i32
    return %c0_i32, %c0_i32_0 : i32, i32
  }
  func.func @transform_7(%arg0: i32) -> (i32, i32) {
    %c0_i32 = arith.constant 0 : i32
    %c0_i32_0 = arith.constant 0 : i32
    %c0_i32_1 = arith.constant 0 : i32
    return %c0_i32, %c0_i32_0 : i32, i32
  }
  func.func @transform_8(%arg0: i32) -> (i32, i32) {
    %c0_i32 = arith.constant 0 : i32
    %c0_i32_0 = arith.constant 0 : i32
    %c0_i32_1 = arith.constant 0 : i32
    return %c0_i32, %c0_i32_0 : i32, i32
  }
  func.func @transform_9(%arg0: i32) -> (i32, i32) {
    %c0_i32 = arith.constant 0 : i32
    %c0_i32_0 = arith.constant 0 : i32
    %c0_i32_1 = arith.constant 0 : i32
    return %c0_i32, %c0_i32_0 : i32, i32
  }
  func.func @transform_10(%arg0: i32) -> (i32, i32) {
    %c0_i32 = arith.constant 0 : i32
    %c0_i32_0 = arith.constant 0 : i32
    %c0_i32_1 = arith.constant 0 : i32
    return %c0_i32, %c0_i32_0 : i32, i32
  }
  func.func @transform_11(%arg0: i32) -> (i32, i32) {
    %c0_i32 = arith.constant 0 : i32
    %c0_i32_0 = arith.constant 0 : i32
    %c0_i32_1 = arith.constant 0 : i32
    return %c0_i32, %c0_i32_0 : i32, i32
  }
  func.func @transform_12(%arg0: i32) -> (i32, i32) {
    %c0_i32 = arith.constant 0 : i32
    %c0_i32_0 = arith.constant 0 : i32
    %c0_i32_1 = arith.constant 0 : i32
    return %c0_i32, %c0_i32_0 : i32, i32
  }
  func.func @transform_13(%arg0: i32) -> (i32, i32) {
    %c0_i32 = arith.constant 0 : i32
    %c0_i32_0 = arith.constant 0 : i32
    %c0_i32_1 = arith.constant 0 : i32
    return %c0_i32, %c0_i32_0 : i32, i32
  }
  func.func @transform_14(%arg0: i32) -> (i32, i32) {
    %c0_i32 = arith.constant 0 : i32
    %c0_i32_0 = arith.constant 0 : i32
    %c0_i32_1 = arith.constant 0 : i32
    return %c0_i32, %c0_i32_0 : i32, i32
  }
  func.func @transform_15(%arg0: i32) -> (i32, i32) {
    %c0_i32 = arith.constant 0 : i32
    %c0_i32_0 = arith.constant 0 : i32
    %c0_i32_1 = arith.constant 0 : i32
    return %c0_i32, %c0_i32_0 : i32, i32
  }
  func.func @transform_16(%arg0: i32) -> (i32, i32) {
    %c0_i32 = arith.constant 0 : i32
    %c0_i32_0 = arith.constant 0 : i32
    %c0_i32_1 = arith.constant 0 : i32
    return %c0_i32, %c0_i32_0 : i32, i32
  }
  func.func @transform_17(%arg0: i32) -> (i32, i32) {
    %c0_i32 = arith.constant 0 : i32
    %c0_i32_0 = arith.constant 0 : i32
    %c0_i32_1 = arith.constant 0 : i32
    return %c0_i32, %c0_i32_0 : i32, i32
  }
  func.func @transform_18(%arg0: i32) -> (i32, i32) {
    %c0_i32 = arith.constant 0 : i32
    %c0_i32_0 = arith.constant 0 : i32
    %c0_i32_1 = arith.constant 0 : i32
    return %c0_i32, %c0_i32_0 : i32, i32
  }
  func.func @transform_19(%arg0: i32) -> (i32, i32) {
    %c0_i32 = arith.constant 0 : i32
    %c0_i32_0 = arith.constant 0 : i32
    %c0_i32_1 = arith.constant 0 : i32
    return %c0_i32, %c0_i32_0 : i32, i32
  }
  func.func @transform_20(%arg0: i32) -> (i32, i32) {
    %c0_i32 = arith.constant 0 : i32
    %c0_i32_0 = arith.constant 0 : i32
    return %arg0, %c0_i32 : i32, i32
  }
}

</mosaic_0001>

<bundles_post_ra>
// kernel: multi_level_interaction.1
= control target key start
LH: loop header
LB: loop body
LE: loop exit
PB: predicated region body
PF: predicated region fallthrough
CT: control target
= control target key end

     0   :  { %s5006_s0 = inlined_call_operand.vmem [shape: f32[16,128], index: 0, kind: input, shape index: {}, may-alias: {0,19}]   ;;  %s5007_s1 = inlined_call_operand.vmem [shape: f32[256,128], index: 1, kind: input, shape index: {}]   ;;  %s5008_s2 = inlined_call_operand.vmem [shape: f32[256,128], index: 2, kind: input, shape index: {}]   ;;  %s5009_s3 = inlined_call_operand.vmem [shape: s32[256,1], index: 3, kind: input, shape index: {}]   ;;  %s5010_s4 = inlined_call_operand.vmem [shape: s32[1,256], index: 4, kind: input, shape index: {}]   ;;  %s5011_s5 = inlined_call_operand.vmem [shape: f32[128,128], index: 5, kind: input, shape index: {}]   ;;  %s5012_s6 = inlined_call_operand.vmem [shape: f32[1,128], index: 6, kind: input, shape index: {}]   ;;  %s5013_s7 = inlined_call_operand.vmem [shape: f32[128,128], index: 7, kind: input, shape index: {}]   ;;  %s5014_s8 = inlined_call_operand.vmem [shape: f32[1,128], index: 8, kind: input, shape index: {}]   ;;  %s5015_s9 = inlined_call_operand.vmem [shape: f32[128,128], index: 9, kind: input, shape index: {}]   ;;  %s5016_s10 = inlined_call_operand.vmem [shape: f32[1,128], index: 10, kind: input, shape index: {}]   ;;  %s5017_s11 = inlined_call_operand.vmem [shape: f32[128,128], index: 11, kind: input, shape index: {}]   ;;  %s5018_s12 = inlined_call_operand.vmem [shape: f32[1,128], index: 12, kind: input, shape index: {}]   ;;  %s5019_s13 = inlined_call_operand.vmem [shape: f32[128,128], index: 13, kind: input, shape index: {}]   ;;  %s5020_s14 = inlined_call_operand.vmem [shape: f32[1,128], index: 14, kind: input, shape index: {}]   ;;  %s5021_s15 = inlined_call_operand.vmem [shape: f32[128,128], index: 15, kind: input, shape index: {}]   ;;  %s5022_s16 = inlined_call_operand.vmem [shape: f32[1,128], index: 16, kind: input, shape index: {}]   ;;  %s5023_s17 = inlined_call_operand.vmem [shape: f32[128,128], index: 17, kind: input, shape index: {}]   ;;  %s5024_s18 = inlined_call_operand.vmem [shape: f32[1,128], index: 18, kind: input, shape index: {}]   ;;  %s5025_s19 = inlined_call_operand.vmem [shape: f32[16,128], index: 19, kind: output, shape index: {0}, may-alias: {0,19}]   ;;  %s5026_s20 = inlined_call_operand.vmem [shape: f32[256,128], index: 20, kind: output, shape index: {1}]  }
   0x1   :  { %5034 = sst [smem:[#allocation5_spill]] %s5006_s0 }
   0x2   :  { %5035 = sst [smem:[#allocation6_spill]] %s5007_s1  ;;  %s3739_s1 = smov 0  }
   0x3   :  { %5036 = sst [smem:[#allocation7_spill]] %s5008_s2 }
   0x4   :  { %5037 = sst [smem:[#allocation8_spill]] %s5009_s3 }
   0x5   :  { %5038 = sst [smem:[#allocation9_spill]] %s5010_s4 }
   0x6   :  { %5039 = sst [smem:[#allocation10_spill]] %s5016_s10 }
   0x7   :  { %5040 = sst [smem:[#allocation11_spill]] %s5019_s13 }
   0x8   :  { %5041 = sst [smem:[#allocation12_spill]] %s5020_s14 }
   0x9   :  { %5042 = sst [smem:[#allocation13_spill]] %s5021_s15 }
   0xa   :  { %5043 = sst [smem:[#allocation14_spill]] %s5022_s16 }
   0xb   :  { %5044 = sst [smem:[#allocation15_spill]] %s5024_s18 }
   0xc   :  { %5045 = sst [smem:[#allocation16_spill]] %s5025_s19 }
   0xd LB: > { %5046 = sst [smem:[#allocation4_spill]] %s3628_s1  ;;  %s3745_s22 = sadd.s32 4294967295, %s3628_s1   ;;  %s3628_s1 = sphi %s3739_s1, %s31_s1  }
   0xe   : > { %p2805_p0 = scmp.ge.s32.totalorder %s3628_s1, 1  ;;  %p591_p1 = scmp.lt.s32.totalorder %s3628_s1, 3 }
  0x10   : > { %p592_p2 = pnand %p2805_p0, %p591_p1 }
  0x11   : > { %s2806_s23 = sshll.u32 (!%p592_p2), %s3745_s22, 4  ;;  %p680_p3 = scmp.lt.s32.totalorder (!%p592_p2), %s3745_s22, 1 }
  0x12   : > { %595 = sbr.rel (%p592_p2) target bundleno = 1504 (0x5e0), region = 96  ;;  %p663_p4 = scmp.lt.s32.totalorder (!%p592_p2), %s2806_s23, 31 }
  0x13   : > { %s5047_s3 = sld [smem:[#allocation9_spill]] (!%p592_p2)  ;;  %p2814_p5 = scmp.ne.s32.totalorder (!%p592_p2), %s3745_s22, 0 }
  0x14   : > { %s5048_s29 = sld [smem:[#allocation6_spill]] (!%p592_p2) }
  0x15   : > { %s5049_s1 = sld [smem:[#allocation7_spill]] (!%p592_p2) }
  0x16   : > { %s5050_s15 = sld [smem:[#allocation8_spill]] (!%p592_p2) }
  0x17   : > { %s3752_s24 = scalar_select %p680_p3, %s3745_s22, 1 }
  0x18   : > { %s5100_s23 = smov (!%p663_p4, %s2806_s23), 31  ;;  %692 = sbr.rel (%p2814_p5) target bundleno = 260 (0x104), region = 100 }
  0x19   : > { %s682_s26 = scalar_lea.vmem %s5047_s3, %s3752_s24  ;;  %s2807_s27 = sshll.u32 %s5100_s23, 3 }
  0x1a   : > { %s3761_s30 = scalar_lea.vmem %s5048_s29, %s2807_s27  ;;  %s3776_s2 = scalar_lea.vmem %s5026_s20, %s2807_s27 }
  0x1b   : > { %s3766_s19 = scalar_lea.vmem %s5049_s1, %s2807_s27  ;;  %s5051_s28 = sld [smem:[#allocation5_spill]] (!%p2814_p5) }
  0x1c   : > { %s3771_s13 = scalar_lea.vmem %s5050_s15, %s2807_s27 }
  0x1d   : > { %v710_v0 = vld [vmem:[%s5011_s5 + $0x78] sm:$0xff]  ;;  %v709_v1 = vld [vmem:[%s5011_s5 + $0x70] sm:$0xff]  ;;  %v708_v2 = vld [vmem:[%s5011_s5 + $0x68] sm:$0xff]  ;;  %v3630_v18 = vmov 0.0  }
  0x1e   : > { %3080 = vmatprep.subr.mxu0 %v710_v0  ;;  %v707_v3 = vld [vmem:[%s5011_s5 + $0x60] sm:$0xff]  ;;  %v706_v5 = vld [vmem:[%s5011_s5 + $0x58] sm:$0xff]  ;;  %v705_v6 = vld [vmem:[%s5011_s5 + $0x50] sm:$0xff]  ;;  %795 = vst [vmem:[#allocation3 + $0x8] sm:$0xff] %v3630_v18 }
  0x1f   : > { %3081 = vmatpush3.msra.mxu0 %v710_v0  ;;  %v704_v7 = vld [vmem:[%s5011_s5 + $0x48] sm:$0xff]  ;;  %v703_v8 = vld [vmem:[%s5011_s5 + $0x40] sm:$0xff]  ;;  %v702_v9 = vld [vmem:[%s5011_s5 + $0x38] sm:$0xff]  ;;  %796 = vst [vmem:[#allocation3] sm:$0xff] %v3630_v18 }
  0x20   : > { %3082 = vmatprep.subr.mxu0 %v709_v1  ;;  %v701_v10 = vld [vmem:[%s5011_s5 + $0x30] sm:$0xff]  ;;  %v700_v11 = vld [vmem:[%s5011_s5 + $0x28] sm:$0xff]  ;;  %v699_v12 = vld [vmem:[%s5011_s5 + $0x20] sm:$0xff] }
  0x21   : > { %3083 = vmatpush3.msra.mxu0 %v709_v1  ;;  %v693_v4 = vld [vmem:[%s5051_s28] sm:$0xff]  ;;  %v698_v13 = vld [vmem:[%s5011_s5 + $0x18] sm:$0xff]  ;;  %v697_v14 = vld [vmem:[%s5011_s5 + $0x10] sm:$0xff] }
  0x22   : > { %3084 = vmatprep.subr.mxu0 %v708_v2  ;;  %3112 = vmatprep.mubr.f32.mxu0 %v693_v4  ;;  %v696_v15 = vld [vmem:[%s5011_s5 + $0x8] sm:$0xff]  ;;  %v695_v16 = vld [vmem:[%s5011_s5] sm:$0xff] }
  0x23   : > { %3085 = vmatpush3.msra.mxu0 %v708_v2  ;;  %v694_v17 = vld [vmem:[%s5051_s28 + $0x8] sm:$0xff]  ;;  %v2815_v19 = vld [vmem:[%s5012_s6] ss:$0 sm:$0xff] }
  0x24   : > { %3086 = vmatprep.subr.mxu0 %v707_v3 }
  0x25   : > { %3087 = vmatpush3.msra.mxu0 %v707_v3 }
  0x26   : > { %3088 = vmatprep.subr.mxu0 %v706_v5 }
  0x27   : > { %3089 = vmatpush3.msra.mxu0 %v706_v5 }
  0x28   : > { %3090 = vmatprep.subr.mxu0 %v705_v6 }
  0x29   : > { %3091 = vmatpush3.msra.mxu0 %v705_v6 }
  0x2a   : > { %3092 = vmatprep.subr.mxu0 %v704_v7 }
  0x2b   : > { %3093 = vmatpush3.msra.mxu0 %v704_v7 }
  0x2c   : > { %3094 = vmatprep.subr.mxu0 %v703_v8 }
  0x2d   : > { %3095 = vmatpush3.msra.mxu0 %v703_v8 }
  0x2e   : > { %3096 = vmatprep.subr.mxu0 %v702_v9 }
  0x2f   : > { %3097 = vmatpush3.msra.mxu0 %v702_v9 }
  0x30   : > { %3098 = vmatprep.subr.mxu0 %v701_v10 }
  0x31   : > { %3099 = vmatpush3.msra.mxu0 %v701_v10 }
  0x32   : > { %3100 = vmatprep.subr.mxu0 %v700_v11 }
  0x33   : > { %3101 = vmatpush3.msra.mxu0 %v700_v11 }
  0x34   : > { %3102 = vmatprep.subr.mxu0 %v699_v12 }
  0x35   : > { %3103 = vmatpush3.msra.mxu0 %v699_v12 }
  0x36   : > { %3104 = vmatprep.subr.mxu0 %v698_v13 }
  0x37   : > { %3105 = vmatpush3.msra.mxu0 %v698_v13 }
  0x38   : > { %3106 = vmatprep.subr.mxu0 %v697_v14 }
  0x39   : > { %3107 = vmatpush3.msra.mxu0 %v697_v14 }
  0x3a   : > { %3108 = vmatprep.subr.mxu0 %v696_v15 }
  0x3b   : > { %3109 = vmatpush3.msra.mxu0 %v696_v15 }
  0x3c   : > { %3110 = vmatprep.subr.mxu0 %v695_v16 }
  0x3d   : > { %3111 = vmatpush3.msra.mxu0 %v695_v16 }
  0x3e   : > { %3113 = vmatmul.mubr.f32.vlgmr.msra.gmra.mxu0 %v694_v17 }
  0xfe   : > { %v3114_v20 = vpop.f32.mrf.mxu0 }
  0xff   : > { %v790_v21 = vadd.f32 %v3114_v20, %v2815_v19 }
 0x100   : > { %v784_v22 = vpop.f32.mrf.mxu0 }
 0x101   : > { %794 = vst [vmem:[#allocation2 + $0x8] sm:$0xff] %v790_v21  ;;  %v785_v23 = vadd.f32 %v2815_v19, %v784_v22 }
 0x103   : > { %793 = vst [vmem:[#allocation2] sm:$0xff] %v785_v23 }
 0x104 PF: > { %v828_v24 = vld [vmem:[%s5013_s7 + $0x78] sm:$0xff]  ;;  %v827_v25 = vld [vmem:[%s5013_s7 + $0x70] sm:$0xff]  ;;  %v3631_v26 = vmov 0   ;;  %v826_v27 = vld [vmem:[%s5013_s7 + $0x68] sm:$0xff]  ;;  %s5069_s4 = sld [smem:[#allocation10_spill]]  ;;  %p2857_p6 = scmp.ne.s32.totalorder %s3745_s22, 1 }
 0x105   : > { %3115 = vmatprep.subr.mxu0 %v828_v24  ;;  %3484 = vset.pattern.permute.xlu0 %v3631_v26  ;;  %v825_v28 = vld [vmem:[%s5013_s7 + $0x60] sm:$0xff]  ;;  %v824_v30 = vld [vmem:[%s5013_s7 + $0x58] sm:$0xff]  ;;  %v823_v31 = vld [vmem:[%s5013_s7 + $0x50] sm:$0xff]  ;;  %s5070_s0 = sld [smem:[#allocation15_spill]] }
 0x106   : > { %3116 = vmatpush3.msra.mxu0 %v828_v24  ;;  %3485 = vset.pattern.permute.xlu1 %v3631_v26  ;;  %v797_v29 = vld [vmem:[%s3766_s19] sm:$0xff]  ;;  %v822_v32 = vld [vmem:[%s5013_s7 + $0x48] sm:$0xff]  ;;  %v1591_v34 = vld [vmem:[%s3771_s13 + $0x10] sm:$0xff]  ;;  %s5092_s25 = sld [smem:[#allocation11_spill]] (!%p2857_p6) }
 0x107   : > { %3117 = vmatprep.subr.mxu0 %v827_v25  ;;  %3147 = vmatprep.mubr.f32.mxu0 %v797_v29  ;;  %v1589_v33 = vld [vmem:[%s3771_s13] sm:$0xff]  ;;  %v1590_v36 = vld [vmem:[%s3771_s13 + $0x8] sm:$0xff]  ;;  %v1592_v37 = vld [vmem:[%s3771_s13 + $0x18] sm:$0xff]  ;;  %s5094_s14 = sld [smem:[#allocation12_spill]] (!%p2857_p6) }
 0x108   : > { %3118 = vmatpush3.msra.mxu0 %v827_v25  ;;  %1608 = vperm.xlu0 %3484, %v1589_v33   ;;  %v821_v35 = vld [vmem:[%s5013_s7 + $0x40] sm:$0xff]  ;;  %v820_v38 = vld [vmem:[%s5013_s7 + $0x38] sm:$0xff]  ;;  %v819_v39 = vld [vmem:[%s5013_s7 + $0x30] sm:$0xff]  ;;  %s5095_s22 = sld [smem:[#allocation14_spill]] (!%p2857_p6) }
 0x109   : > { %3119 = vmatprep.subr.mxu0 %v826_v27  ;;  %1614 = vperm.xlu1 %3485, %v1591_v34   ;;  %v1593_v40 = vld [vmem:[%s3771_s13 + $0x20] sm:$0xff]  ;;  %v1594_v41 = vld [vmem:[%s3771_s13 + $0x28] sm:$0xff]  ;;  %v1595_v44 = vld [vmem:[%s3771_s13 + $0x30] sm:$0xff]  ;;  %s5096_s18 = sld [smem:[#allocation5_spill]] (!%p2857_p6) }
 0x10a   : > { %3120 = vmatpush3.msra.mxu0 %v826_v27  ;;  %v818_v42 = vld [vmem:[%s5013_s7 + $0x28] sm:$0xff]  ;;  %v817_v43 = vld [vmem:[%s5013_s7 + $0x20] sm:$0xff]  ;;  %v1596_v45 = vld [vmem:[%s3771_s13 + $0x38] sm:$0xff] }
 0x10b   : > { %3121 = vmatprep.subr.mxu0 %v825_v28  ;;  %v816_v46 = vld [vmem:[%s5013_s7 + $0x18] sm:$0xff]  ;;  %v815_v47 = vld [vmem:[%s5013_s7 + $0x10] sm:$0xff]  ;;  %v1597_v48 = vld [vmem:[%s3771_s13 + $0x40] sm:$0xff] }
 0x10c   : > { %3122 = vmatpush3.msra.mxu0 %v825_v28  ;;  %1611 = vperm.xlu0 %3484, %v1590_v36   ;;  %v1598_v49 = vld [vmem:[%s3771_s13 + $0x48] sm:$0xff]  ;;  %v813_v51 = vld [vmem:[%s5013_s7] sm:$0xff]  ;;  %v1599_v52 = vld [vmem:[%s3771_s13 + $0x50] sm:$0xff] }
 0x10d   : > { %3123 = vmatprep.subr.mxu0 %v824_v30  ;;  %1617 = vperm.xlu1 %3485, %v1592_v37   ;;  %v814_v50 = vld [vmem:[%s5013_s7 + $0x8] sm:$0xff]  ;;  %v1600_v53 = vld [vmem:[%s3771_s13 + $0x58] sm:$0xff]  ;;  %v799_v56 = vld [vmem:[%s3766_s19 + $0x10] sm:$0xff] }
 0x10e   : > { %3124 = vmatpush3.msra.mxu0 %v824_v30  ;;  %v798_v54 = vld [vmem:[%s3766_s19 + $0x8] sm:$0xff]  ;;  %v1436_v55 = vld [vmem:[%s5017_s11 + $0x78] sm:$0xff]  ;;  %v1601_v57 = vld [vmem:[%s3771_s13 + $0x60] sm:$0xff] }
 0x10f   : > { %3125 = vmatprep.subr.mxu0 %v823_v31  ;;  %v1435_v58 = vld [vmem:[%s5017_s11 + $0x70] sm:$0xff]  ;;  %v1602_v59 = vld [vmem:[%s3771_s13 + $0x68] sm:$0xff]  ;;  %v800_v60 = vld [vmem:[%s3766_s19 + $0x18] sm:$0xff] }
 0x110   : > { %3126 = vmatpush3.msra.mxu0 %v823_v31  ;;  %1620 = vperm.xlu0 %3484, %v1593_v40   ;;  %v1434_v61 = vld [vmem:[%s5017_s11 + $0x68] sm:$0xff]  ;;  %v801_v62 = vld [vmem:[%s3766_s19 + $0x20] sm:$0xff]  ;;  %v1603_v63 = vld [vmem:[%s3771_s13 + $0x70] sm:$0xff] }
 0x111   : > { %3127 = vmatprep.subr.mxu0 %v822_v32  ;;  %1623 = vperm.xlu1 %3485, %v1594_v41   ;;  %v1433_v0 = vld [vmem:[%s5017_s11 + $0x60] sm:$0xff]  ;;  %v1604_v1 = vld [vmem:[%s3771_s13 + $0x78] sm:$0xff]  ;;  %v802_v2 = vld [vmem:[%s3766_s19 + $0x28] sm:$0xff] }
 0x112   : > { %3128 = vmatpush3.msra.mxu0 %v822_v32  ;;  %v803_v3 = vld [vmem:[%s3766_s19 + $0x30] sm:$0xff]  ;;  %v804_v4 = vld [vmem:[%s3766_s19 + $0x38] sm:$0xff]  ;;  %v805_v5 = vld [vmem:[%s3766_s19 + $0x40] sm:$0xff] }
 0x113   : > { %3129 = vmatprep.subr.mxu0 %v821_v35  ;;  %v806_v6 = vld [vmem:[%s3766_s19 + $0x48] sm:$0xff]  ;;  %v807_v7 = vld [vmem:[%s3766_s19 + $0x50] sm:$0xff]  ;;  %v808_v8 = vld [vmem:[%s3766_s19 + $0x58] sm:$0xff] }
 0x114   : > { %3130 = vmatpush3.msra.mxu0 %v821_v35  ;;  %1626 = vperm.xlu0 %3484, %v1595_v44   ;;  %v809_v9 = vld [vmem:[%s3766_s19 + $0x60] sm:$0xff]  ;;  %v810_v10 = vld [vmem:[%s3766_s19 + $0x68] sm:$0xff]  ;;  %v811_v11 = vld [vmem:[%s3766_s19 + $0x70] sm:$0xff] }
 0x115   : > { %3131 = vmatprep.subr.mxu0 %v820_v38  ;;  %1629 = vperm.xlu1 %3485, %v1596_v45   ;;  %v812_v12 = vld [vmem:[%s3766_s19 + $0x78] sm:$0xff]  ;;  %v1431_v14 = vld [vmem:[%s5017_s11 + $0x50] sm:$0xff]  ;;  %v1430_v15 = vld [vmem:[%s5017_s11 + $0x48] sm:$0xff]  ;;  %s5093_s19 = sld [smem:[#allocation13_spill]] (!%p2857_p6) }
 0x116   : > { %3132 = vmatpush3.msra.mxu0 %v820_v38  ;;  %v1432_v13 = vld [vmem:[%s5017_s11 + $0x58] sm:$0xff]  ;;  %v1429_v16 = vld [vmem:[%s5017_s11 + $0x40] sm:$0xff]  ;;  %v1427_v18 = vld [vmem:[%s5017_s11 + $0x30] sm:$0xff] }
 0x117   : > { %3133 = vmatprep.subr.mxu0 %v819_v39  ;;  %v1428_v17 = vld [vmem:[%s5017_s11 + $0x38] sm:$0xff]  ;;  %v1426_v19 = vld [vmem:[%s5017_s11 + $0x28] sm:$0xff]  ;;  %v1425_v20 = vld [vmem:[%s5017_s11 + $0x20] sm:$0xff] }
 0x118   : > { %3134 = vmatpush3.msra.mxu0 %v819_v39  ;;  %1632 = vperm.xlu0 %3484, %v1597_v48   ;;  %v1424_v21 = vld [vmem:[%s5017_s11 + $0x18] sm:$0xff]  ;;  %v1423_v23 = vld [vmem:[%s5017_s11 + $0x10] sm:$0xff]  ;;  %v1422_v25 = vld [vmem:[%s5017_s11 + $0x8] sm:$0xff] }
 0x119   : > { %3135 = vmatprep.subr.mxu0 %v818_v42  ;;  %1635 = vperm.xlu1 %3485, %v1598_v49   ;;  %v1252_v22 = vld [vmem:[%s5015_s9 + $0x78] sm:$0xff]  ;;  %v1251_v24 = vld [vmem:[%s5015_s9 + $0x70] sm:$0xff]  ;;  %v1250_v26 = vld [vmem:[%s5015_s9 + $0x68] sm:$0xff] }
 0x11a   : > { %3136 = vmatpush3.msra.mxu0 %v818_v42  ;;  %3171 = vmatprep.subr.mxu1 %v1252_v22  ;;  %v1421_v27 = vld [vmem:[%s5017_s11] sm:$0xff]  ;;  %v1406_v30 = vld [vmem:[%s3761_s30 + $0x8] sm:$0xff]  ;;  %v1248_v31 = vld [vmem:[%s5015_s9 + $0x58] sm:$0xff] }
 0x11b   : > { %3137 = vmatprep.subr.mxu0 %v817_v43  ;;  %3172 = vmatpush3.msra.mxu1 %v1252_v22  ;;  %v1249_v28 = vld [vmem:[%s5015_s9 + $0x60] sm:$0xff]  ;;  %v1247_v32 = vld [vmem:[%s5015_s9 + $0x50] sm:$0xff]  ;;  %v1408_v34 = vld [vmem:[%s3761_s30 + $0x18] sm:$0xff] }
 0x11c   : > { %3138 = vmatpush3.msra.mxu0 %v817_v43  ;;  %1638 = vperm.xlu0 %3484, %v1599_v52   ;;  %v1405_v29 = vld [vmem:[%s3761_s30] sm:$0xff]  ;;  %v1407_v33 = vld [vmem:[%s3761_s30 + $0x10] sm:$0xff]  ;;  %v1246_v35 = vld [vmem:[%s5015_s9 + $0x48] sm:$0xff] }
 0x11d   : > { %3139 = vmatprep.subr.mxu0 %v816_v46  ;;  %1641 = vperm.xlu1 %3485, %v1600_v53   ;;  %v1245_v36 = vld [vmem:[%s5015_s9 + $0x40] sm:$0xff]  ;;  %v1410_v38 = vld [vmem:[%s3761_s30 + $0x28] sm:$0xff]  ;;  %v1244_v39 = vld [vmem:[%s5015_s9 + $0x38] sm:$0xff] }
 0x11e   : > { %3140 = vmatpush3.msra.mxu0 %v816_v46  ;;  %3173 = vmatprep.subr.mxu1 %v1251_v24  ;;  %v1409_v37 = vld [vmem:[%s3761_s30 + $0x20] sm:$0xff]  ;;  %v1243_v40 = vld [vmem:[%s5015_s9 + $0x30] sm:$0xff]  ;;  %v1412_v42 = vld [vmem:[%s3761_s30 + $0x38] sm:$0xff] }
 0x11f   : > { %3141 = vmatprep.subr.mxu0 %v815_v47  ;;  %3174 = vmatpush3.msra.mxu1 %v1251_v24  ;;  %v1411_v41 = vld [vmem:[%s3761_s30 + $0x30] sm:$0xff]  ;;  %v1242_v43 = vld [vmem:[%s5015_s9 + $0x28] sm:$0xff]  ;;  %v1241_v44 = vld [vmem:[%s5015_s9 + $0x20] sm:$0xff] }
 0x120   : > { %3142 = vmatpush3.msra.mxu0 %v815_v47  ;;  %1644 = vperm.xlu0 %3484, %v1601_v57   ;;  %v1413_v45 = vld [vmem:[%s3761_s30 + $0x40] sm:$0xff]  ;;  %v1240_v46 = vld [vmem:[%s5015_s9 + $0x18] sm:$0xff]  ;;  %v1414_v47 = vld [vmem:[%s3761_s30 + $0x48] sm:$0xff] }
 0x121   : > { %3143 = vmatprep.subr.mxu0 %v814_v50  ;;  %1647 = vperm.xlu1 %3485, %v1602_v59   ;;  %v1239_v48 = vld [vmem:[%s5015_s9 + $0x10] sm:$0xff]  ;;  %v1237_v52 = vld [vmem:[%s5015_s9] sm:$0xff]  ;;  %v1420_v57 = vld [vmem:[%s3761_s30 + $0x78] sm:$0xff] }
 0x122   : > { %3144 = vmatpush3.msra.mxu0 %v814_v50  ;;  %3175 = vmatprep.subr.mxu1 %v1250_v26  ;;  %v1415_v49 = vld [vmem:[%s3761_s30 + $0x50] sm:$0xff]  ;;  %v1238_v50 = vld [vmem:[%s5015_s9 + $0x8] sm:$0xff]  ;;  %v1417_v53 = vld [vmem:[%s3761_s30 + $0x60] sm:$0xff] }
 0x123   : > { %3145 = vmatprep.subr.mxu0 %v813_v51  ;;  %3176 = vmatpush3.msra.mxu1 %v1250_v26 }
 0x124   : > { %3146 = vmatpush3.msra.mxu0 %v813_v51  ;;  %1650 = vperm.xlu0 %3484, %v1603_v63   ;;  %v1416_v51 = vld [vmem:[%s3761_s30 + $0x58] sm:$0xff] }
 0x125   : > { %3148 = vmatmul.mubr.f32.vlgmr.msra.gmra.mxu0 %v798_v54  ;;  %3227 = vmatprep.subr.mxu0 %v1436_v55  ;;  %v1418_v54 = vld [vmem:[%s3761_s30 + $0x68] sm:$0xff] }
 0x126   : > { %3150 = vmatprep.mubr.f32.mxu0 %v799_v56  ;;  %3228 = vmatpush3.msra.mxu0 %v1436_v55  ;;  %v4026_v55 = vld [vmem:[#allocation2 + $0x8] sm:$0xff]  ;;  %v1419_v56 = vld [vmem:[%s3761_s30 + $0x70] sm:$0xff] }
 0x127   : > { %3229 = vmatprep.subr.mxu0 %v1435_v58  ;;  %1653 = vperm.xlu1 %3485, %v1604_v1  }
 0x128   : > { %3230 = vmatpush3.msra.mxu0 %v1435_v58  ;;  %3177 = vmatprep.subr.mxu1 %v1249_v28  ;;  %v4034_v58 = vld [vmem:[%s5014_s8] ss:$0 sm:$0xff] }
 0x129   : > { %3151 = vmatmul.mubr.f32.gmra.mxu0 %v800_v60  ;;  %3231 = vmatprep.subr.mxu0 %v1434_v61 }
 0x12a   : > { %3153 = vmatprep.mubr.f32.mxu0 %v801_v62  ;;  %3232 = vmatpush3.msra.mxu0 %v1434_v61 }
 0x12b   : > { %3233 = vmatprep.subr.mxu0 %v1433_v0  ;;  %3178 = vmatpush3.msra.mxu1 %v1249_v28 }
 0x12c   : > { %3234 = vmatpush3.msra.mxu0 %v1433_v0  ;;  %3179 = vmatprep.subr.mxu1 %v1248_v31 }
 0x12d   : > { %3154 = vmatmul.mubr.f32.gmra.mxu0 %v802_v2  ;;  %3235 = vmatprep.subr.mxu0 %v1432_v13 }
 0x12e   : > { %3156 = vmatprep.mubr.f32.mxu0 %v803_v3  ;;  %3236 = vmatpush3.msra.mxu0 %v1432_v13 }
 0x12f   : > { %3237 = vmatprep.subr.mxu0 %v1431_v14  ;;  %3180 = vmatpush3.msra.mxu1 %v1248_v31 }
 0x130   : > { %3238 = vmatpush3.msra.mxu0 %v1431_v14  ;;  %3181 = vmatprep.subr.mxu1 %v1247_v32 }
 0x131   : > { %3157 = vmatmul.mubr.f32.gmra.mxu0 %v804_v4  ;;  %3239 = vmatprep.subr.mxu0 %v1430_v15 }
 0x132   : > { %3159 = vmatprep.mubr.f32.mxu0 %v805_v5  ;;  %3240 = vmatpush3.msra.mxu0 %v1430_v15 }
 0x133   : > { %3241 = vmatprep.subr.mxu0 %v1429_v16  ;;  %3182 = vmatpush3.msra.mxu1 %v1247_v32 }
 0x134   : > { %3242 = vmatpush3.msra.mxu0 %v1429_v16  ;;  %3183 = vmatprep.subr.mxu1 %v1246_v35 }
 0x135   : > { %3160 = vmatmul.mubr.f32.gmra.mxu0 %v806_v6  ;;  %3243 = vmatprep.subr.mxu0 %v1428_v17 }
 0x136   : > { %3162 = vmatprep.mubr.f32.mxu0 %v807_v7  ;;  %3244 = vmatpush3.msra.mxu0 %v1428_v17 }
 0x137   : > { %3245 = vmatprep.subr.mxu0 %v1427_v18  ;;  %3184 = vmatpush3.msra.mxu1 %v1246_v35 }
 0x138   : > { %3246 = vmatpush3.msra.mxu0 %v1427_v18  ;;  %3185 = vmatprep.subr.mxu1 %v1245_v36 }
 0x139   : > { %3163 = vmatmul.mubr.f32.gmra.mxu0 %v808_v8  ;;  %3247 = vmatprep.subr.mxu0 %v1426_v19 }
 0x13a   : > { %3165 = vmatprep.mubr.f32.mxu0 %v809_v9  ;;  %3248 = vmatpush3.msra.mxu0 %v1426_v19 }
 0x13b   : > { %3249 = vmatprep.subr.mxu0 %v1425_v20  ;;  %3186 = vmatpush3.msra.mxu1 %v1245_v36 }
 0x13c   : > { %3250 = vmatpush3.msra.mxu0 %v1425_v20  ;;  %3187 = vmatprep.subr.mxu1 %v1244_v39 }
 0x13d   : > { %3166 = vmatmul.mubr.f32.gmra.mxu0 %v810_v10  ;;  %3251 = vmatprep.subr.mxu0 %v1424_v21 }
 0x13e   : > { %3168 = vmatprep.mubr.f32.mxu0 %v811_v11  ;;  %3252 = vmatpush3.msra.mxu0 %v1424_v21 }
 0x13f   : > { %3253 = vmatprep.subr.mxu0 %v1423_v23  ;;  %3188 = vmatpush3.msra.mxu1 %v1244_v39 }
 0x140   : > { %3254 = vmatpush3.msra.mxu0 %v1423_v23  ;;  %3189 = vmatprep.subr.mxu1 %v1243_v40 }
 0x141   : > { %3169 = vmatmul.mubr.f32.gmra.mxu0 %v812_v12  ;;  %3255 = vmatprep.subr.mxu0 %v1422_v25 }
 0x142   : > { %3256 = vmatpush3.msra.mxu0 %v1422_v25  ;;  %3259 = vmatprep.mubr.f32.mxu0 %v1405_v29 }
 0x143   : > { %3257 = vmatprep.subr.mxu0 %v1421_v27  ;;  %3190 = vmatpush3.msra.mxu1 %v1243_v40 }
 0x144   : > { %3258 = vmatpush3.msra.mxu0 %v1421_v27  ;;  %3191 = vmatprep.subr.mxu1 %v1242_v43 }
 0x145   : > { %3260 = vmatmul.mubr.f32.vlgmr.msra.gmra.mxu0 %v1406_v30  ;;  %3192 = vmatpush3.msra.mxu1 %v1242_v43 }
 0x146   : > { %3262 = vmatprep.mubr.f32.mxu0 %v1407_v33  ;;  %3193 = vmatprep.subr.mxu1 %v1241_v44 }
 0x147   : > { %3194 = vmatpush3.msra.mxu1 %v1241_v44 }
 0x148   : > { %3195 = vmatprep.subr.mxu1 %v1240_v46 }
 0x149   : > { %3263 = vmatmul.mubr.f32.gmra.mxu0 %v1408_v34  ;;  %3196 = vmatpush3.msra.mxu1 %v1240_v46 }
 0x14a   : > { %3265 = vmatprep.mubr.f32.mxu0 %v1409_v37  ;;  %3197 = vmatprep.subr.mxu1 %v1239_v48 }
 0x14b   : > { %3198 = vmatpush3.msra.mxu1 %v1239_v48 }
 0x14c   : > { %3199 = vmatprep.subr.mxu1 %v1238_v50 }
 0x14d   : > { %3266 = vmatmul.mubr.f32.gmra.mxu0 %v1410_v38  ;;  %3200 = vmatpush3.msra.mxu1 %v1238_v50 }
 0x14e   : > { %3268 = vmatprep.mubr.f32.mxu0 %v1411_v41  ;;  %3201 = vmatprep.subr.mxu1 %v1237_v52 }
 0x14f   : > { %3202 = vmatpush3.msra.mxu1 %v1237_v52 }
 0x150   : > { %3283 = vmatprep.subr.mxu1 %v4026_v55 }
 0x151   : > { %3269 = vmatmul.mubr.f32.gmra.mxu0 %v1412_v42 }
 0x152   : > { %3271 = vmatprep.mubr.f32.mxu0 %v1413_v45 }
 0x155   : > { %3272 = vmatmul.mubr.f32.gmra.mxu0 %v1414_v47 }
 0x156   : > { %3274 = vmatprep.mubr.f32.mxu0 %v1415_v49 }
 0x159   : > { %3275 = vmatmul.mubr.f32.gmra.mxu0 %v1416_v51 }
 0x15a   : > { %3277 = vmatprep.mubr.f32.mxu0 %v1417_v53 }
 0x15d   : > { %3278 = vmatmul.mubr.f32.gmra.mxu0 %v1418_v54 }
 0x15e   : > { %3280 = vmatprep.mubr.f32.mxu0 %v1419_v56 }
 0x161   : > { %3281 = vmatmul.mubr.f32.gmra.mxu0 %v1420_v57 }
 0x1e5   : > { %v3149_v59 = vpop.f32.mrf.mxu0 }
 0x1e6   : > { %v4037_v60 = vadd.f32 %v3149_v59, %v4034_v58 }
 0x1e7   : > { %v902_v61 = vpop.f32.mrf.mxu0 }
 0x1e8   : > { %v4040_v62 = vmul.f32 0.5, %v4037_v60  ;;  %v4043_v63 = vadd.f32 %v4034_v58, %v902_v61 }
 0x1e9   : > { %v3152_v0 = vpop.f32.mrf.mxu0 }
 0x1ea   : > { %v998_v1 = vmin.f32 %v4040_v62, 14.0  ;;  %v4047_v2 = vmul.f32 0.5, %v4043_v63  ;;  %v4050_v3 = vadd.f32 %v3152_v0, %v4034_v58  ;;  %vm1014_vm2 = vcmp.gt.f32.partialorder %v4040_v62, 14.0 }
 0x1eb   : > { %v912_v4 = vpop.f32.mrf.mxu0 }
 0x1ec   : > { %v997_v5 = vmin.f32 %v4047_v2, 14.0  ;;  %v4054_v6 = vmul.f32 0.5, %v4050_v3  ;;  %v4057_v7 = vadd.f32 %v4034_v58, %v912_v4  ;;  %v1031_v8 = vmul.f32 1.442695, %v998_v1 }
 0x1ed   : > { %v3155_v9 = vpop.f32.mrf.mxu0  ;;  %vm1013_vm1 = vcmp.gt.f32.partialorder %v4047_v2, 14.0 }
 0x1ee   : > { %v1029_v10 = vmul.f32 1.442695, %v997_v5  ;;  %v4060_v11 = vmul.f32 0.5, %v4057_v7  ;;  %v1000_v12 = vmin.f32 %v4054_v6, 14.0  ;;  %v4064_v13 = vadd.f32 %v3155_v9, %v4034_v58 }
 0x1ef   : > { %v922_v14 = vpop.f32.mrf.mxu0  ;;  %vm1016_vm7 = vcmp.gt.f32.partialorder %v4054_v6, 14.0 }
 0x1f0   : > { %3486 = vpow2.f32 %v1029_v10  ;;  %v999_v15 = vmin.f32 %v4060_v11, 14.0  ;;  %v4068_v16 = vadd.f32 %v4034_v58, %v922_v14  ;;  %v4071_v17 = vmul.f32 0.5, %v4064_v13 }
 0x1f1   : > { %3488 = vpow2.f32 %v1031_v8  ;;  %v3158_v18 = vpop.f32.mrf.mxu0  ;;  %v1035_v22 = vmul.f32 1.442695, %v1000_v12  ;;  %vm1015_vm4 = vcmp.gt.f32.partialorder %v4060_v11, 14.0 }
 0x1f2   : > { %v1033_v19 = vmul.f32 1.442695, %v999_v15  ;;  %v4074_v20 = vmul.f32 0.5, %v4068_v16  ;;  %v4077_v21 = vadd.f32 %v3158_v18, %v4034_v58  ;;  %v1002_v24 = vmin.f32 %v4071_v17, 14.0 }
 0x1f3   : > { %v932_v23 = vpop.f32.mrf.mxu0  ;;  %vm1018_vm10 = vcmp.gt.f32.partialorder %v4071_v17, 14.0 }
 0x1f4   : > { %v1001_v25 = vmin.f32 %v4074_v20, 14.0  ;;  %v4082_v26 = vmul.f32 0.5, %v4077_v21  ;;  %v4085_v27 = vadd.f32 %v4034_v58, %v932_v23  ;;  %3490 = vpow2.f32 %v1033_v19 }
 0x1f5   : > { %v3161_v28 = vpop.f32.mrf.mxu0  ;;  %3492 = vpow2.f32 %v1035_v22  ;;  %v1039_v34 = vmul.f32 1.442695, %v1002_v24  ;;  %vm1017_vm9 = vcmp.gt.f32.partialorder %v4074_v20, 14.0 }
 0x1f6   : > { %v1037_v29 = vmul.f32 1.442695, %v1001_v25  ;;  %v4088_v30 = vmul.f32 0.5, %v4085_v27  ;;  %v4091_v31 = vadd.f32 %v3161_v28, %v4034_v58  ;;  %v1004_v32 = vmin.f32 %v4082_v26, 14.0 }
 0x1f7   : > { %v942_v33 = vpop.f32.mrf.mxu0 }
 0x1f8   : > { %v1003_v35 = vmin.f32 %v4088_v30, 14.0  ;;  %v4096_v36 = vmul.f32 0.5, %v4091_v31  ;;  %v4099_v37 = vadd.f32 %v4034_v58, %v942_v33  ;;  %3494 = vpow2.f32 %v1037_v29 }
 0x1f9   : > { %v3164_v38 = vpop.f32.mrf.mxu0  ;;  %v1043_v41 = vmul.f32 1.442695, %v1004_v32  ;;  %3496 = vpow2.f32 %v1039_v34  ;;  %vm1019_vm12 = vcmp.gt.f32.partialorder %v4088_v30, 14.0 }
 0x1fa   : > { %v1041_v39 = vmul.f32 1.442695, %v1003_v35  ;;  %v4102_v40 = vadd.f32 %v3164_v38, %v4034_v58  ;;  %v4105_v42 = vmul.f32 0.5, %v4099_v37  ;;  %v1006_v44 = vmin.f32 %v4096_v36, 14.0 }
 0x1fb   : > { %v952_v43 = vpop.f32.mrf.mxu0 }
 0x1fc   : > { %v4109_v45 = vadd.f32 %v4034_v58, %v952_v43  ;;  %v1005_v47 = vmin.f32 %v4105_v42, 14.0  ;;  %3498 = vpow2.f32 %v1041_v39  ;;  %v4117_v50 = vmul.f32 0.5, %v4102_v40 }
 0x1fd   : > { %v4111_v46 = vpop.eup %3486  ;;  %v3167_v48 = vpop.f32.mrf.mxu0  ;;  %3500 = vpow2.f32 %v1043_v41  ;;  %v1047_v57 = vmul.f32 1.442695, %v1006_v44 }
 0x1fe   : > { %v4114_v49 = vpop.eup %3488  ;;  %v4120_v51 = vmul.f32 0.5, %v4109_v45  ;;  %v4123_v52 = vadd.f32 %v3167_v48, %v4034_v58  ;;  %v1045_v53 = vmul.f32 1.442695, %v1005_v47  ;;  %v1061_v56 = vadd.f32 1.0, %v4111_v46 }
 0x1ff   : > { %v962_v54 = vpop.f32.mrf.mxu0  ;;  %v1070_v4 = vadd.f32 1.0, %v4114_v49  ;;  %v1008_v8 = vmin.f32 %v4117_v50, 14.0  ;;  %v1064_v24 = vmul.f32 -0.5, %v4111_v46  ;;  %v1067_v38 = vand.u32 2147483647, %v4111_v46 }
 0x200   : > { %v1007_v59 = vmin.f32 %v4120_v51, 14.0  ;;  %v4128_v61 = vmul.f32 0.5, %v4123_v52  ;;  %v4131_v0 = vadd.f32 %v4034_v58, %v962_v54  ;;  %3502 = vpow2.f32 %v1045_v53 }
 0x201   : > { %v3170_v1 = vpop.f32.mrf.mxu0  ;;  %v4134_v5 = vpop.eup %3490  ;;  %3504 = vlog2.f32 %v1061_v56  ;;  %v1051_v28 = vmul.f32 1.442695, %v1008_v8  ;;  %v1073_v39 = vmul.f32 -0.5, %v4114_v49  ;;  %v1065_v43 = vadd.f32 1.0, %v1064_v24 }
 0x202   : > { %v4138_v9 = vmul.f32 0.5, %v4131_v0  ;;  %v1010_v10 = vmin.f32 %v4128_v61, 14.0  ;;  %v4142_v12 = vadd.f32 %v3170_v1, %v4034_v58  ;;  %v4144_v15 = vpop.eup %3492  ;;  %3506 = vpow2.f32 %v1047_v57 }
 0x203   : > { %v972_v14 = vpop.f32.mrf.mxu0  ;;  %v1049_v18 = vmul.f32 1.442695, %v1007_v59  ;;  %3508 = vlog2.f32 %v1070_v4  ;;  %v1079_v25 = vadd.f32 1.0, %v4134_v5  ;;  %v1082_v44 = vmul.f32 -0.5, %v4134_v5 }
 0x204   : > { %v1009_v19 = vmin.f32 %v4138_v9, 14.0  ;;  %v4148_v22 = vadd.f32 %v4034_v58, %v972_v14  ;;  %v4151_v23 = vmul.f32 0.5, %v4142_v12  ;;  %v1055_v33 = vmul.f32 1.442695, %v1010_v10 }
 0x205   : > { %v4158_v32 = vpop.eup %3494  ;;  %3510 = vlog2.f32 %v1079_v25  ;;  %v1088_v58 = vadd.f32 1.0, %v4144_v15  ;;  %v1076_v56 = vand.u32 2147483647, %v4114_v49  ;;  %v1091_v57 = vmul.f32 -0.5, %v4144_v15 }
 0x206   : > { %v4156_v29 = vmul.f32 0.5, %v4148_v22  ;;  %v1012_v34 = vmin.f32 %v4151_v23, 14.0  ;;  %3512 = vpow2.f32 %v1049_v18  ;;  %v1053_v35 = vmul.f32 1.442695, %v1009_v19  ;;  %v4164_v41 = vpop.eup %3496 }
 0x207   : > { %3514 = vlog2.f32 %v1088_v58  ;;  %v1097_v48 = vadd.f32 1.0, %v4158_v32  ;;  %vm4175_vm0 = vcmp.lt.f32.partialorder %v1067_v38, 0.0004427343  ;;  %v1074_v4 = vadd.f32 1.0, %v1073_v39 }
 0x208   : > { %3516 = vpow2.f32 %v1051_v28  ;;  %v1011_v47 = vmin.f32 %v4156_v29, 14.0  ;;  %v1059_v54 = vmul.f32 1.442695, %v1012_v34  ;;  %v1106_v8 = vadd.f32 1.0, %v4164_v41 }
 0x209   : > { %v4169_v53 = vpop.eup %3498  ;;  %3518 = vpow2.f32 %v1055_v33  ;;  %v1066_v10 = vmul.f32 %v4111_v46, %v1065_v43  ;;  %v1083_v14 = vadd.f32 1.0, %v1082_v44  ;;  %v1085_v18 = vand.u32 2147483647, %v4134_v5 }
 0x20a   : > { %v4173_v59 = vpop.eup %3500  ;;  %3520 = vpow2.f32 %v1053_v35  ;;  %v1057_v19 = vmul.f32 1.442695, %v1011_v47  ;;  %v1094_v24 = vand.u32 2147483647, %v4144_v15  ;;  %v1115_v25 = vadd.f32 1.0, %v4169_v53 }
 0x20b   : > { %3522 = vlog2.f32 %v1097_v48  ;;  %v1092_v33 = vadd.f32 1.0, %v1091_v57  ;;  %v1100_v34 = vmul.f32 -0.5, %v4158_v32  ;;  %v1124_v46 = vadd.f32 1.0, %v4173_v59  ;;  %v1703_v48 = vld [vmem:[#allocation2] sm:$0xff] }
 0x20c   : > { %3524 = vlog2.f32 %v1106_v8  ;;  %v1075_v35 = vmul.f32 %v4114_v49, %v1074_v4  ;;  %vm4191_vm3 = vcmp.lt.f32.partialorder %v1076_v56, 0.0004427343  ;;  %v1103_v39 = vand.u32 2147483647, %v4158_v32 }
 0x20d   : > { %v4185_v28 = vpop.eup %3502  ;;  %3526 = vpow2.f32 %v1059_v54  ;;  %v1084_v47 = vmul.f32 %v4134_v5, %v1083_v14  ;;  %vm4200_vm5 = vcmp.lt.f32.partialorder %v1085_v18, 0.0004427343  ;;  %vm4204_vm6 = vcmp.lt.f32.partialorder %v1094_v24, 0.0004427343  ;;  %v4262_v54 = vld [vmem:[%s5023_s17 + $0x78] sm:$0xff] }
 0x20e   : > { %v3505_v58 = vpop.eup %3504  ;;  %3528 = vlog2.f32 %v1115_v25  ;;  %v1109_v56 = vmul.f32 -0.5, %v4164_v41  ;;  %v1133_v57 = vadd.f32 1.0, %v4185_v28  ;;  %v1093_v5 = vmul.f32 %v4144_v15, %v1092_v33 }
 0x20f   : > { %v4196_v43 = vpop.eup %3506  ;;  %v1063_v44 = vmul.f32 0.6931472, %v3505_v58  ;;  %3530 = vlog2.f32 %v1124_v46  ;;  %v1101_v14 = vadd.f32 1.0, %v1100_v34  ;;  %vm4214_vm8 = vcmp.lt.f32.partialorder %v1103_v39, 0.0004427343 }
 0x210   : > { %v3509_v49 = vpop.eup %3508  ;;  %3532 = vpow2.f32 %v1057_v19  ;;  %v1112_v24 = vand.u32 2147483647, %v4164_v41  ;;  %v1118_v46 = vmul.f32 -0.5, %v4169_v53  ;;  %v1127_v15 = vmul.f32 -0.5, %v4173_v59 }
 0x211   : > { %v1069_v4 = vsel %vm4175_vm0, %v1066_v10, %v1063_v44  ;;  %v1072_v8 = vmul.f32 0.6931472, %v3509_v49  ;;  %3534 = vlog2.f32 %v1133_v57  ;;  %v1142_v33 = vadd.f32 1.0, %v4196_v43 }
 0x212   : > { %v3511_v18 = vpop.eup %3510  ;;  %v1205_v25 = vmul.f32 2.0, %v1069_v4  ;;  %v1110_v49 = vadd.f32 1.0, %v1109_v56  ;;  %v1121_v4 = vand.u32 2147483647, %v4169_v53  ;;  %v1102_v56 = vmul.f32 %v4158_v32, %v1101_v14 }
 0x213   : > { %v4220_v58 = vpop.eup %3512  ;;  %v1078_v1 = vsel %vm4191_vm3, %v1075_v35, %v1072_v8  ;;  %v1081_v10 = vmul.f32 0.6931472, %v3511_v18  ;;  %v1136_v8 = vmul.f32 -0.5, %v4185_v28  ;;  %3536 = vlog2.f32 %v1142_v33 }
 0x214   : > { %v3515_v34 = vpop.eup %3514  ;;  %v1221_v39 = vsel %vm1013_vm1, %v4043_v63, %v1205_v25  ;;  %v1206_v44 = vmul.f32 2.0, %v1078_v1  ;;  %v1119_v25 = vadd.f32 1.0, %v1118_v46  ;;  %v1130_v33 = vand.u32 2147483647, %v4173_v59 }
 0x215   : > { %v4230_v57 = vpop.eup %3516  ;;  %3203 = vmatprep.mubr.f32.mxu1 %v1221_v39  ;;  %v1087_v35 = vsel %vm4200_vm5, %v1084_v47, %v1081_v10  ;;  %v1090_v38 = vmul.f32 0.6931472, %v3515_v34  ;;  %v1128_v10 = vadd.f32 1.0, %v1127_v15  ;;  %v1151_v34 = vadd.f32 1.0, %v4220_v58 }
 0x216   : > { %v4236_v18 = vpop.eup %3518  ;;  %v1222_v63 = vsel %vm1014_vm2, %v4037_v60, %v1206_v44  ;;  %v1207_v2 = vmul.f32 2.0, %v1087_v35  ;;  %v1111_v14 = vmul.f32 %v4164_v41, %v1110_v49  ;;  %vm4254_vm11 = vcmp.lt.f32.partialorder %v1112_v24, 0.0004427343 }
 0x217   : > { %v4243_v47 = vpop.eup %3520  ;;  %3204 = vmatmul.mubr.f32.vlgmr.msra.gmra.mxu1 %v1222_v63  ;;  %v1096_v1 = vsel %vm4204_vm6, %v1093_v5, %v1090_v38  ;;  %vm4264_vm13 = vcmp.lt.f32.partialorder %v1121_v4, 0.0004427343  ;;  %3538 = vlog2.f32 %v1151_v34  ;;  %v1145_v39 = vmul.f32 -0.5, %v4196_v43 }
 0x218   : > { %v3523_v62 = vpop.eup %3522  ;;  %3284 = vmatpush3.msra.mxu1 %v4026_v55  ;;  %v1223_v60 = vsel %vm1015_vm4, %v4057_v7, %v1207_v2  ;;  %v1208_v32 = vmul.f32 2.0, %v1096_v1  ;;  %v1137_v7 = vadd.f32 1.0, %v1136_v8  ;;  %v1160_v44 = vadd.f32 1.0, %v4230_v57 }
 0x219   : > { %v3525_v5 = vpop.eup %3524  ;;  %3206 = vmatprep.mubr.f32.mxu1 %v1223_v60  ;;  %v1099_v55 = vmul.f32 0.6931472, %v3523_v62  ;;  %3285 = vmatprep.subr.mxu1 %v1703_v48  ;;  %v1120_v35 = vmul.f32 %v4169_v53, %v1119_v25  ;;  %v1129_v38 = vmul.f32 %v4173_v59, %v1128_v10  ;;  %vm4279_vm14 = vcmp.lt.f32.partialorder %v1130_v33, 0.0004427343 }
 0x21a   : > { %v4268_v41 = vpop.eup %3526  ;;  %v1224_v24 = vsel %vm1016_vm7, %v4050_v3, %v1208_v32  ;;  %v1108_v15 = vmul.f32 0.6931472, %v3525_v5  ;;  %3286 = vmatpush3.msra.mxu1 %v1703_v48  ;;  %3540 = vlog2.f32 %v1160_v44  ;;  %v1138_v53 = vmul.f32 %v4185_v28, %v1137_v7 }
 0x21b   : > { %v3529_v49 = vpop.eup %3528  ;;  %3207 = vmatmul.mubr.f32.gmra.mxu1 %v1224_v24  ;;  %v1105_v4 = vsel %vm4214_vm8, %v1102_v56, %v1099_v55  ;;  %3346 = vmatprep.subr.mxu1 %v4262_v54  ;;  %v1139_v59 = vand.u32 2147483647, %v4185_v28  ;;  %v1146_v10 = vadd.f32 1.0, %v1145_v39  ;;  %v1169_v33 = vadd.f32 1.0, %v4243_v47 }
 0x21c   : > { %v3531_v3 = vpop.eup %3530  ;;  %v1209_v6 = vmul.f32 2.0, %v1105_v4  ;;  %v1114_v63 = vsel %vm4254_vm11, %v1111_v14, %v1108_v15  ;;  %v1117_v2 = vmul.f32 0.6931472, %v3529_v49  ;;  %v1154_v32 = vmul.f32 -0.5, %v4220_v58 }
 0x21d   : > { %v4286_v48 = vpop.eup %3532  ;;  %v1210_v19 = vmul.f32 2.0, %v1114_v63  ;;  %v1126_v56 = vmul.f32 0.6931472, %v3531_v3  ;;  %v1148_v14 = vand.u32 2147483647, %v4196_v43  ;;  %3542 = vlog2.f32 %v1169_v33 }
 0x21e   : > { %v1225_v25 = vsel %vm1017_vm9, %v4068_v16, %v1209_v6  ;;  %v1123_v1 = vsel %vm4264_vm13, %v1120_v35, %v1117_v2  ;;  %v3535_v34 = vpop.eup %3534  ;;  %vm1140_vm15 = vcmp.lt.f32.partialorder %v1139_v59, 0.0004427343  ;;  %v1163_v17 = vmul.f32 -0.5, %v4230_v57  ;;  %v4323_v2 = vpop.permute.xlu0 %1608 }
 0x21f   : > { %3209 = vmatprep.mubr.f32.mxu1 %v1225_v25  ;;  %v1226_v62 = vsel %vm1018_vm10, %v4064_v13, %v1210_v19  ;;  %v1211_v60 = vmul.f32 2.0, %v1123_v1  ;;  %v1132_v28 = vsel %vm4279_vm14, %v1129_v38, %v1126_v56  ;;  %v1135_v20 = vmul.f32 0.6931472, %v3535_v34  ;;  %v4328_v1 = vpop.permute.xlu1 %1614 }
 0x220   : > { %3210 = vmatmul.mubr.f32.gmra.mxu1 %v1226_v62  ;;  %v1212_v16 = vmul.f32 2.0, %v1132_v28  ;;  %v3537_v13 = vpop.eup %3536  ;;  %vm1020_vm0 = vcmp.gt.f32.partialorder %v4082_v26, 14.0  ;;  %v1147_v55 = vmul.f32 %v4196_v43, %v1146_v10  ;;  %v1178_v11 = vadd.f32 1.0, %v4236_v18 }
 0x221   : > { %v1227_v46 = vsel %vm1019_vm12, %v4085_v27, %v1211_v60  ;;  %v1141_v5 = vsel %vm1140_vm15, %v1138_v53, %v1135_v20  ;;  %v1144_v15 = vmul.f32 0.6931472, %v3537_v13  ;;  %v1155_v39 = vadd.f32 1.0, %v1154_v32 }
 0x222   : > { %3212 = vmatprep.mubr.f32.mxu1 %v1227_v46  ;;  %v1228_v7 = vsel %vm1020_vm0, %v4077_v21, %v1212_v16  ;;  %v1213_v24 = vmul.f32 2.0, %v1141_v5  ;;  %vm1021_vm1 = vcmp.gt.f32.partialorder %v4105_v42, 14.0  ;;  %vm1149_vm2 = vcmp.lt.f32.partialorder %v1148_v14, 0.0004427343  ;;  %v1612_v28 = vpop.permute.xlu0 %1611 }
 0x223   : > { %v1157_v27 = vand.u32 2147483647, %v4220_v58  ;;  %3544 = vlog2.f32 %v1178_v11  ;;  %v1150_v26 = vsel %vm1149_vm2, %v1147_v55, %v1144_v15  ;;  %v1164_v44 = vadd.f32 1.0, %v1163_v17 }
 0x224   : > { %3213 = vmatmul.mubr.f32.gmra.mxu1 %v1228_v7  ;;  %v1229_v30 = vsel %vm1021_vm1, %v4099_v37, %v1213_v24  ;;  %v1187_v43 = vadd.f32 1.0, %v4286_v48  ;;  %v3539_v49 = vpop.eup %3538  ;;  %vm1022_vm3 = vcmp.gt.f32.partialorder %v4096_v36, 14.0  ;;  %v1214_v21 = vmul.f32 2.0, %v1150_v26 }
 0x225   : > { %3215 = vmatprep.mubr.f32.mxu1 %v1229_v30  ;;  %v1172_v4 = vmul.f32 -0.5, %v4243_v47  ;;  %v1153_v35 = vmul.f32 0.6931472, %v3539_v49  ;;  %v1156_v42 = vmul.f32 %v4220_v58, %v1155_v39  ;;  %v1166_v38 = vand.u32 2147483647, %v4230_v57 }
 0x226   : > { %3546 = vlog2.f32 %v1187_v43  ;;  %v1230_v8 = vsel %vm1022_vm3, %v4091_v31, %v1214_v21  ;;  %vm1158_vm4 = vcmp.lt.f32.partialorder %v1157_v27, 0.0004427343  ;;  %v1196_v37 = vadd.f32 1.0, %v4268_v41 }
 0x227   : > { %v3541_v3 = vpop.eup %3540  ;;  %v1159_v6 = vsel %vm1158_vm4, %v1156_v42, %v1153_v35  ;;  %v1165_v63 = vmul.f32 %v4230_v57, %v1164_v44  ;;  %v1181_v36 = vmul.f32 -0.5, %v4236_v18  ;;  %v1173_v58 = vadd.f32 1.0, %v1172_v4 }
 0x228   : > { %3216 = vmatmul.mubr.f32.gmra.mxu1 %v1230_v8  ;;  %v1215_v19 = vmul.f32 2.0, %v1159_v6  ;;  %v1162_v56 = vmul.f32 0.6931472, %v3541_v3  ;;  %3548 = vlog2.f32 %v1196_v37  ;;  %vm1023_vm5 = vcmp.gt.f32.partialorder %v4120_v51, 14.0  ;;  %v2040_v37 = vld [vmem:[%s5023_s17 + $0x70] sm:$0xff]  ;;  %v2039_v3 = vld [vmem:[%s5023_s17 + $0x68] sm:$0xff] }
 0x229   : > { %vm1167_vm6 = vcmp.lt.f32.partialorder %v1166_v38, 0.0004427343  ;;  %v1175_v31 = vand.u32 2147483647, %v4243_v47  ;;  %v1190_v10 = vmul.f32 -0.5, %v4286_v48  ;;  %vm1024_vm7 = vcmp.gt.f32.partialorder %v4117_v50, 14.0 }
 0x22a   : > { %v1231_v53 = vsel %vm1023_vm5, %v4109_v45, %v1215_v19  ;;  %v1168_v59 = vsel %vm1167_vm6, %v1165_v63, %v1162_v56  ;;  %v3543_v25 = vpop.eup %3542  ;;  %v1174_v34 = vmul.f32 %v4243_v47, %v1173_v58  ;;  %v1182_v62 = vadd.f32 1.0, %v1181_v36 }
 0x22b   : > { %3218 = vmatprep.mubr.f32.mxu1 %v1231_v53  ;;  %v1216_v57 = vmul.f32 2.0, %v1168_v59  ;;  %v1171_v33 = vmul.f32 0.6931472, %v3543_v25  ;;  %vm1176_vm8 = vcmp.lt.f32.partialorder %v1175_v31, 0.0004427343  ;;  %v1605_v45 = vlaneseq  ;;  %v2036_v53 = vld [vmem:[%s5023_s17 + $0x50] sm:$0xff] }
 0x22c   : > { %v1184_v60 = vand.u32 2147483647, %v4236_v18  ;;  %v1199_v16 = vmul.f32 -0.5, %v4268_v41  ;;  %v1191_v46 = vadd.f32 1.0, %v1190_v10  ;;  %vm1025_vm9 = vcmp.gt.f32.partialorder %v4138_v9, 14.0 }
 0x22d   : > { %v1232_v51 = vsel %vm1024_vm7, %v4102_v40, %v1216_v57  ;;  %v1177_v32 = vsel %vm1176_vm8, %v1174_v34, %v1171_v33  ;;  %v1183_v47 = vmul.f32 %v4236_v18, %v1182_v62  ;;  %v1193_v17 = vand.u32 2147483647, %v4286_v48  ;;  %v1618_v40 = vpop.permute.xlu1 %1617  ;;  %v1621_v18 = vpop.permute.xlu0 %1620  ;;  %v2034_v33 = vld [vmem:[%s5023_s17 + $0x40] sm:$0xff] }
 0x22e   : > { %3219 = vmatmul.mubr.f32.gmra.mxu1 %v1232_v51  ;;  %v1217_v14 = vmul.f32 2.0, %v1177_v32  ;;  %vm1185_vm10 = vcmp.lt.f32.partialorder %v1184_v60, 0.0004427343  ;;  %v4341_v55 = vand.u32 127, %v1605_v45  ;;  %v1200_v7 = vadd.f32 1.0, %v1199_v16  ;;  %v2033_v51 = vld [vmem:[%s5023_s17 + $0x38] sm:$0xff] }
 0x22f   : > { %v1192_v9 = vmul.f32 %v4286_v48, %v1191_v46  ;;  %v1202_v39 = vand.u32 2147483647, %v4268_v41  ;;  %vm1026_vm11 = vcmp.gt.f32.partialorder %v4128_v61, 14.0  ;;  %vm1194_vm12 = vcmp.lt.f32.partialorder %v1193_v17, 0.0004427343  ;;  %v2032_v16 = vld [vmem:[%s5023_s17 + $0x30] sm:$0xff] }
 0x230   : > { %v3545_v20 = vpop.eup %3544  ;;  %v1233_v13 = vsel %vm1025_vm9, %v4131_v0, %v1217_v14  ;;  %v1201_v43 = vmul.f32 %v4268_v41, %v1200_v7  ;;  %vm1655_vm13 = vcmp.eq.s32.totalorder %v4341_v55, %v4323_v2  ;;  %vm1027_vm14 = vcmp.gt.f32.partialorder %v4156_v29, 14.0  ;;  %v4354_v41 = vpop.f32.mrf.mxu0  ;;  %v2038_v2 = vld [vmem:[%s5023_s17 + $0x60] sm:$0xff]  ;;  %v2031_v14 = vld [vmem:[%s5023_s17 + $0x28] sm:$0xff] }
 0x231   : > { %v1180_v50 = vmul.f32 0.6931472, %v3545_v20  ;;  %3221 = vmatprep.mubr.f32.mxu1 %v1233_v13  ;;  %v1624_v49 = vpop.permute.xlu1 %1623  ;;  %vm1203_vm15 = vcmp.lt.f32.partialorder %v1202_v39, 0.0004427343  ;;  %v3632_v4 = vmov 0.0   ;;  %v1627_v35 = vpop.permute.xlu0 %1626  ;;  %vm1028_vm0 = vcmp.gt.f32.partialorder %v4151_v23, 14.0 }
 0x232   : > { %vm1705_vm1 = vcmask 130048   ;;  %vm1657_vm2 = vcmp.eq.s32.totalorder %v4341_v55, %v4328_v1  ;;  %vm1656_vm3 = vcmp.eq.s32.totalorder %v4341_v55, %v1612_v28  ;;  %vm1658_vm4 = vcmp.eq.s32.totalorder %v4341_v55, %v1618_v40  ;;  %v2035_v1 = vld [vmem:[%s5023_s17 + $0x48] sm:$0xff]  ;;  %v2030_v17 = vld [vmem:[%s5023_s17 + $0x20] sm:$0xff] }
 0x233   : > { %v3547_v5 = vpop.eup %3546  ;;  %v1186_v11 = vsel %vm1185_vm10, %v1183_v47, %v1180_v50  ;;  %v2821_v38 = vsel %vm1657_vm2, 1.0, %v3632_v4  ;;  %v2820_v23 = vsel %vm1656_vm3, 1.0, %v3632_v4  ;;  %vm1659_vm5 = vcmp.eq.s32.totalorder %v4341_v55, %v1621_v18  ;;  %v2027_v18 = vld [vmem:[%s5023_s17 + $0x8] sm:$0xff] }
 0x234   : > { %v1218_v24 = vmul.f32 2.0, %v1186_v11  ;;  %v1189_v15 = vmul.f32 0.6931472, %v3547_v5  ;;  %v2822_v63 = vsel %vm1658_vm4, 1.0, %v3632_v4  ;;  %v2823_v19 = vsel %vm1659_vm5, 1.0, %v3632_v4  ;;  %v2029_v5 = vld [vmem:[%s5023_s17 + $0x18] sm:$0xff] }
 0x235   : > { %v3549_v27 = vpop.eup %3548  ;;  %v1630_v42 = vpop.permute.xlu1 %1629  ;;  %vm1660_vm6 = vcmp.eq.s32.totalorder %v4341_v55, %v1624_v49  ;;  %vm1661_vm7 = vcmp.eq.s32.totalorder %v4341_v55, %v1627_v35  ;;  %v2818_v11 = vld [vmem:[%s5018_s12] ss:$0 sm:$0xff] }
 0x236   : > { %v1234_v0 = vsel %vm1026_vm11, %v4123_v52, %v1218_v24  ;;  %v1195_v30 = vsel %vm1194_vm12, %v1192_v9, %v1189_v15  ;;  %v1198_v44 = vmul.f32 0.6931472, %v3549_v27  ;;  %v2819_v52 = vsel %vm1655_vm13, 1.0, %v3632_v4  ;;  %v2028_v15 = vld [vmem:[%s5023_s17 + $0x10] sm:$0xff] }
 0x237   : > { %3222 = vmatmul.mubr.f32.gmra.mxu1 %v1234_v0  ;;  %v1219_v26 = vmul.f32 2.0, %v1195_v30  ;;  %v2824_v31 = vsel %vm1660_vm6, 1.0, %v3632_v4  ;;  %v2825_v59 = vsel %vm1661_vm7, 1.0, %v3632_v4  ;;  %vm1662_vm8 = vcmp.eq.s32.totalorder %v4341_v55, %v1630_v42 }
 0x238   : > { %v1204_v61 = vsel %vm1203_vm15, %v1201_v43, %v1198_v44  ;;  %v2826_v10 = vsel %vm1662_vm8, 1.0, %v3632_v4  ;;  %v4469_v30 = vadd.f32 %v4354_v41, %v2818_v11 }
 0x239   : > { %v1235_v48 = vsel %vm1027_vm14, %v4148_v22, %v1219_v26  ;;  %v1220_v21 = vmul.f32 2.0, %v1204_v61  ;;  %v4360_v22 = vpop.f32.mrf.mxu0  ;;  %v1636_v36 = vpop.permute.xlu1 %1635 }
 0x23a   : > { %3224 = vmatprep.mubr.f32.mxu1 %v1235_v48  ;;  %vm1664_vm10 = vcmp.eq.s32.totalorder %v4341_v55, %v1636_v36  ;;  %v4458_v39 = vadd.f32 %v2818_v11, %v4360_v22 }
 0x23b   : > { %v1236_v29 = vsel %vm1028_vm0, %v4142_v12, %v1220_v21  ;;  %v4364_v8 = vpop.f32.mrf.mxu0  ;;  %v1633_v12 = vpop.permute.xlu0 %1632  ;;  %v2828_v28 = vsel %vm1664_vm10, 1.0, %v3632_v4 }
 0x23c   : > { %3225 = vmatmul.mubr.f32.gmra.mxu1 %v1236_v29  ;;  %vm1663_vm9 = vcmp.eq.s32.totalorder %v4341_v55, %v1633_v12  ;;  %v4476_v43 = vadd.f32 %v4364_v8, %v2818_v11 }
 0x23d   : > { %3287 = vmatprep.mubr.msk.f32.mxu1 %vm1705_vm1, %v2819_v52  ;;  %v4378_v6 = vpop.f32.mrf.mxu0  ;;  %v1642_v25 = vpop.permute.xlu1 %1641  ;;  %v2827_v34 = vsel %vm1663_vm9, 1.0, %v3632_v4 }
 0x23e   : > { %vm1666_vm12 = vcmp.eq.s32.totalorder %v4341_v55, %v1642_v25  ;;  %v4473_v26 = vadd.f32 %v2818_v11, %v4378_v6  ;;  %v4519_v6 = vld [vmem:[%s682_s26] ss:$0 sm:$0xff] }
 0x23f   : > { %v1639_v56 = vpop.permute.xlu0 %1638  ;;  %v4392_v58 = vpop.f32.mrf.mxu0  ;;  %v2830_v47 = vsel %vm1666_vm12, 1.0, %v3632_v4 }
 0x240   : > { %3288 = vmatmul.mubr.msk.f32.vlgmr.msra.gmra.mxu1 %vm1705_vm1, %v2820_v23  ;;  %vm1665_vm11 = vcmp.eq.s32.totalorder %v4341_v55, %v1639_v56  ;;  %v4484_v61 = vadd.f32 %v4392_v58, %v2818_v11 }
 0x241   : > { %3290 = vmatprep.mubr.msk.f32.mxu1 %vm1705_vm1, %v2821_v38  ;;  %3347 = vmatpush3.msra.mxu1 %v4262_v54  ;;  %v2037_v54 = vld [vmem:[%s5023_s17 + $0x58] sm:$0xff]  ;;  %v4406_v57 = vpop.f32.mrf.mxu0  ;;  %v1648_v32 = vpop.permute.xlu1 %1647  ;;  %v2829_v20 = vsel %vm1665_vm11, 1.0, %v3632_v4 }
 0x242   : > { %3348 = vmatprep.subr.mxu1 %v2040_v37  ;;  %vm1668_vm14 = vcmp.eq.s32.totalorder %v4341_v55, %v1648_v32  ;;  %v4481_v49 = vadd.f32 %v2818_v11, %v4406_v57 }
 0x243   : > { %3349 = vmatpush3.msra.mxu1 %v2040_v37  ;;  %v1645_v62 = vpop.permute.xlu0 %1644  ;;  %v4420_v60 = vpop.f32.mrf.mxu0  ;;  %v2832_v24 = vsel %vm1668_vm14, 1.0, %v3632_v4 }
 0x244   : > { %3291 = vmatmul.mubr.msk.f32.gmra.mxu1 %vm1705_vm1, %v2822_v63  ;;  %3350 = vmatprep.subr.mxu1 %v2039_v3  ;;  %vm1667_vm13 = vcmp.eq.s32.totalorder %v4341_v55, %v1645_v62  ;;  %v4491_v52 = vadd.f32 %v4420_v60, %v2818_v11  ;;  %v1933_v63 = vshrl.u32 %v1605_v45, 7 }
 0x245   : > { %3293 = vmatprep.mubr.msk.f32.mxu1 %vm1705_vm1, %v2823_v19  ;;  %3351 = vmatpush3.msra.mxu1 %v2039_v3  ;;  %v1540_v50 = vpop.f32.mrf.mxu0  ;;  %v2831_v40 = vsel %vm1667_vm13, 1.0, %v3632_v4  ;;  %v1654_v13 = vpop.permute.xlu1 %1653 }
 0x246   : > { %3352 = vmatprep.subr.mxu1 %v2038_v2  ;;  %vm1670_vm0 = vcmp.eq.s32.totalorder %v4341_v55, %v1654_v13  ;;  %v4488_v21 = vadd.f32 %v2818_v11, %v1540_v50  ;;  %v4522_v36 = vadd.s32 8, %v1933_v63 }
 0x247   : > { %3353 = vmatpush3.msra.mxu1 %v2038_v2  ;;  %v1651_v46 = vpop.permute.xlu0 %1650  ;;  %v3273_v7 = vpop.f32.mrf.mxu0  ;;  %v2834_v0 = vsel %vm1670_vm0, 1.0, %v3632_v4  ;;  %v5033_v2 = vmov 1.0  }
 0x248   : > { %3294 = vmatmul.mubr.msk.f32.gmra.mxu1 %vm1705_vm1, %v2824_v31  ;;  %3354 = vmatprep.subr.mxu1 %v2037_v54  ;;  %vm1669_vm15 = vcmp.eq.s32.totalorder %v4341_v55, %v1651_v46  ;;  %v2026_v55 = vld [vmem:[%s5023_s17] sm:$0xff]  ;;  %v4497_v29 = vadd.f32 %v3273_v7, %v2818_v11  ;;  %vm1940_vm2 = vcmp.eq.s32.totalorder %v4522_v36, %v4519_v6 }
 0x249   : > { %3296 = vmatprep.mubr.msk.f32.mxu1 %vm1705_vm1, %v2825_v59  ;;  %3355 = vmatpush3.msra.mxu1 %v2037_v54  ;;  %v2833_v9 = vsel %vm1669_vm15, 1.0, %v3632_v4  ;;  %v1550_v27 = vpop.f32.mrf.mxu0 }
 0x24a   : > { %3356 = vmatprep.subr.mxu1 %v2036_v53  ;;  %v4495_v35 = vadd.f32 %v2818_v11, %v1550_v27 }
 0x24b   : > { %3357 = vmatpush3.msra.mxu1 %v2036_v53  ;;  %v3276_v44 = vpop.f32.mrf.mxu0 }
 0x24c   : > { %3297 = vmatmul.mubr.msk.f32.gmra.mxu1 %vm1705_vm1, %v2826_v10  ;;  %3358 = vmatprep.subr.mxu1 %v2035_v1  ;;  %v4503_v38 = vadd.f32 %v3276_v44, %v2818_v11 }
 0x24d   : > { %3299 = vmatprep.mubr.msk.f32.mxu1 %vm1705_vm1, %v2827_v34  ;;  %3359 = vmatpush3.msra.mxu1 %v2035_v1  ;;  %v1560_v48 = vpop.f32.mrf.mxu0 }
 0x24e   : > { %3360 = vmatprep.subr.mxu1 %v2034_v33  ;;  %v4501_v22 = vadd.f32 %v2818_v11, %v1560_v48 }
 0x24f   : > { %3361 = vmatpush3.msra.mxu1 %v2034_v33  ;;  %v3279_v4 = vpop.f32.mrf.mxu0 }
 0x250   : > { %3300 = vmatmul.mubr.msk.f32.gmra.mxu1 %vm1705_vm1, %v2828_v28  ;;  %3362 = vmatprep.subr.mxu1 %v2033_v51  ;;  %v4509_v37 = vadd.f32 %v3279_v4, %v2818_v11 }
 0x251   : > { %3302 = vmatprep.mubr.msk.f32.mxu1 %vm1705_vm1, %v2829_v20  ;;  %3363 = vmatpush3.msra.mxu1 %v2033_v51  ;;  %v1570_v41 = vpop.f32.mrf.mxu0 }
 0x252   : > { %3364 = vmatprep.subr.mxu1 %v2032_v16  ;;  %v4507_v8 = vadd.f32 %v2818_v11, %v1570_v41 }
 0x253   : > { %3365 = vmatpush3.msra.mxu1 %v2032_v16  ;;  %v3282_v42 = vpop.f32.mrf.mxu0 }
 0x254   : > { %3303 = vmatmul.mubr.msk.f32.gmra.mxu1 %vm1705_vm1, %v2830_v47  ;;  %3366 = vmatprep.subr.mxu1 %v2031_v14  ;;  %v1586_v3 = vadd.f32 %v3282_v42, %v2818_v11 }
 0x255   : > { %3305 = vmatprep.mubr.msk.f32.mxu1 %vm1705_vm1, %v2831_v40  ;;  %3367 = vmatpush3.msra.mxu1 %v2031_v14  ;;  %v1580_v23 = vpop.f32.mrf.mxu0 }
 0x256   : > { %3368 = vmatprep.subr.mxu1 %v2030_v17  ;;  %v1581_v12 = vadd.f32 %v2818_v11, %v1580_v23  ;;  %v4563_v11 = vld [vmem:[%s5069_s4] ss:$0 sm:$0xff]  ;;  %s5097_s4 = sld [smem:[#allocation16_spill]] (!%p2857_p6) }
 0x257   : > { %3369 = vmatpush3.msra.mxu1 %v2030_v17 }
 0x258   : > { %3306 = vmatmul.mubr.msk.f32.gmra.mxu1 %vm1705_vm1, %v2832_v24  ;;  %3370 = vmatprep.subr.mxu1 %v2029_v5 }
 0x259   : > { %3308 = vmatprep.mubr.msk.f32.mxu1 %vm1705_vm1, %v2833_v9  ;;  %3371 = vmatpush3.msra.mxu1 %v2029_v5 }
 0x25a   : > { %3372 = vmatprep.subr.mxu1 %v2028_v15 }
 0x25b   : > { %3373 = vmatpush3.msra.mxu1 %v2028_v15 }
 0x25c   : > { %3309 = vmatmul.mubr.msk.f32.gmra.mxu1 %vm1705_vm1, %v2834_v0  ;;  %3374 = vmatprep.subr.mxu1 %v2027_v18  ;;  %vm1939_vm1 = vcmp.eq.s32.totalorder %v1933_v63, %v4519_v6 }
 0x25d   : > { %3375 = vmatpush3.msra.mxu1 %v2027_v18  ;;  %3378 = vmatprep.mubr.f32.mxu1 %v4458_v39 }
 0x25e   : > { %3376 = vmatprep.subr.mxu1 %v2026_v55  ;;  %3343 = vmatprep.mubr.msk.f32.mxu0 %vm1939_vm1, %v5033_v2 }
 0x25f   : > { %3377 = vmatpush3.msra.mxu1 %v2026_v55  ;;  %v4571_v55 = vld [vmem:[%s5070_s0] ss:$0 sm:$0xff] }
 0x260   : > { %3379 = vmatmul.mubr.f32.vlgmr.msra.gmra.mxu1 %v4469_v30 }
 0x261   : > { %3381 = vmatprep.mubr.f32.mxu1 %v4473_v26 }
 0x264   : > { %3382 = vmatmul.mubr.f32.gmra.mxu1 %v4476_v43 }
 0x265   : > { %3384 = vmatprep.mubr.f32.mxu1 %v4481_v49 }
 0x268   : > { %3385 = vmatmul.mubr.f32.gmra.mxu1 %v4484_v61 }
 0x269   : > { %3387 = vmatprep.mubr.f32.mxu1 %v4488_v21 }
 0x26c   : > { %3388 = vmatmul.mubr.f32.gmra.mxu1 %v4491_v52 }
 0x26d   : > { %3390 = vmatprep.mubr.f32.mxu1 %v4495_v35 }
 0x270   : > { %3391 = vmatmul.mubr.f32.gmra.mxu1 %v4497_v29 }
 0x271   : > { %3393 = vmatprep.mubr.f32.mxu1 %v4501_v22 }
 0x274   : > { %3394 = vmatmul.mubr.f32.gmra.mxu1 %v4503_v38 }
 0x275   : > { %3396 = vmatprep.mubr.f32.mxu1 %v4507_v8 }
 0x278   : > { %3397 = vmatmul.mubr.f32.gmra.mxu1 %v4509_v37 }
 0x279   : > { %3399 = vmatprep.mubr.f32.mxu1 %v1581_v12 }
 0x27c   : > { %3400 = vmatmul.mubr.f32.gmra.mxu1 %v1586_v3 }
 0x2d7   : > { %v4528_v19 = vpop.f32.mrf.mxu1 }
 0x2d9   : > { %v4530_v54 = vpop.f32.mrf.mxu1 }
 0x2db   : > { %v4532_v56 = vpop.f32.mrf.mxu1 }
 0x2dd   : > { %v4534_v58 = vpop.f32.mrf.mxu1 }
 0x2e0   : > { %v4536_v31 = vpop.f32.mrf.mxu1 }
 0x2e2   : > { %v4538_v45 = vpop.f32.mrf.mxu1 }
 0x2e4   : > { %v4540_v53 = vpop.f32.mrf.mxu1 }
 0x2e6   : > { %v4542_v59 = vpop.f32.mrf.mxu1 }
 0x2e8   : > { %v3217_v25 = vpop.f32.mrf.mxu1 }
 0x2ea   : > { %v1366_v1 = vpop.f32.mrf.mxu1 }
 0x2ee   : > { %v3220_v57 = vpop.f32.mrf.mxu1 }
 0x2ef   : > { %v1382_v23 = vadd.f32 %v3220_v57, %v4563_v11 }
 0x2f0   : > { %v1376_v10 = vpop.f32.mrf.mxu1 }
 0x2f7   : > { %v3223_v33 = vpop.f32.mrf.mxu1 }
 0x2f8   : > { %v1392_v9 = vadd.f32 %v3223_v33, %v4563_v11 }
 0x2f9   : > { %v1386_v34 = vpop.f32.mrf.mxu1 }
 0x2fa   : > { %v1387_v44 = vadd.f32 %v4563_v11, %v1386_v34 }
 0x2fc   : > { %v3226_v62 = vpop.f32.mrf.mxu1 }
 0x2fd   : > { %v1402_v24 = vadd.f32 %v3226_v62, %v4563_v11 }
 0x2fe   : > { %v1396_v51 = vpop.f32.mrf.mxu1 }
 0x2ff   : > { %v1397_v18 = vadd.f32 %v4563_v11, %v1396_v51  ;;  %v1377_v51 = vadd.f32 %v4563_v11, %v1376_v10 }
 0x300   : > { %v4544_v60 = vpop.f32.mrf.mxu1 }
 0x302   : > { %v4546_v28 = vpop.f32.mrf.mxu1 }
 0x304   : > { %v4548_v32 = vpop.f32.mrf.mxu1 }
 0x306   : > { %v4550_v16 = vpop.f32.mrf.mxu1 }
 0x308   : > { %v4552_v20 = vpop.f32.mrf.mxu1 }
 0x30a   : > { %v4554_v14 = vpop.f32.mrf.mxu1 }
 0x30c   : > { %v4556_v46 = vpop.f32.mrf.mxu1 }
 0x30e   : > { %v4558_v50 = vpop.f32.mrf.mxu1 }
 0x310   : > { %v3301_v47 = vpop.f32.mrf.mxu1 }
 0x312   : > { %v1860_v17 = vpop.f32.mrf.mxu1 }
 0x314   : > { %v3304_v40 = vpop.f32.mrf.mxu1 }
 0x316   : > { %v1870_v13 = vpop.f32.mrf.mxu1 }
 0x317   : > { %v1909_v57 = vmul.f32 %v1870_v13, %v1377_v51 }
 0x318   : > { %v3307_v5 = vpop.f32.mrf.mxu1 }
 0x319   : > { %v1912_v48 = vmul.f32 %v3307_v5, %v1392_v9  ;;  %v1367_v9 = vadd.f32 %v4563_v11, %v1366_v1 }
 0x31a   : > { %v1880_v7 = vpop.f32.mrf.mxu1 }
 0x31b   : > { %v1911_v63 = vmul.f32 %v1880_v7, %v1387_v44  ;;  %v1928_v2 = vadd.f32 %v1912_v48, %v4509_v37  ;;  %v1362_v44 = vadd.f32 %v4540_v53, %v4563_v11  ;;  %v1907_v48 = vmul.f32 %v1860_v17, %v1367_v9 }
 0x31c   : > { %v3310_v15 = vpop.f32.mrf.mxu1 }
 0x31d   : > { %v1914_v27 = vmul.f32 %v3310_v15, %v1402_v24  ;;  %v1910_v15 = vmul.f32 %v3304_v40, %v1382_v23  ;;  %v1927_v7 = vadd.f32 %v1911_v63, %v4507_v8 }
 0x31e   : > { %v1890_v0 = vpop.f32.mrf.mxu1 }
 0x31f   : > { %v1930_v4 = vadd.f32 %v1914_v27, %v1586_v3  ;;  %v1913_v41 = vmul.f32 %v1890_v0, %v1397_v18 }
 0x320   : > { %v3380_v42 = vpop.f32.mrf.mxu1 }
 0x321   : > { %v1929_v62 = vadd.f32 %v1913_v41, %v1581_v12  ;;  %3311 = vmatprep.subr.mxu0 %v1930_v4  ;;  %v4576_v33 = vadd.f32 %v3380_v42, %v4571_v55  ;;  %v1372_v12 = vadd.f32 %v3217_v25, %v4563_v11  ;;  %v1926_v25 = vadd.f32 %v1910_v15, %v4503_v38 }
 0x322   : > { %3312 = vmatpush3.msra.mxu0 %v1930_v4  ;;  %v2115_v24 = vpop.f32.mrf.mxu1  ;;  %v1357_v41 = vadd.f32 %v4563_v11, %v4542_v59  ;;  %v1906_v42 = vmul.f32 %v4556_v46, %v1362_v44  ;;  %v1352_v59 = vadd.f32 %v4536_v31, %v4563_v11  ;;  %v1347_v31 = vadd.f32 %v4563_v11, %v4538_v45 }
 0x323   : > { %3313 = vmatprep.subr.mxu0 %v1929_v62  ;;  %v4581_v3 = vmul.f32 0.5, %v4576_v33  ;;  %v4584_v34 = vadd.f32 %v4571_v55, %v2115_v24  ;;  %v1908_v18 = vmul.f32 %v3301_v47, %v1372_v12  ;;  %v1342_v45 = vadd.f32 %v4532_v56, %v4563_v11 }
 0x324   : > { %3314 = vmatpush3.msra.mxu0 %v1929_v62  ;;  %v3383_v5 = vpop.f32.mrf.mxu1  ;;  %v1905_v46 = vmul.f32 %v4558_v50, %v1357_v41  ;;  %v1904_v50 = vmul.f32 %v4552_v20, %v1352_v59  ;;  %v1903_v20 = vmul.f32 %v4554_v14, %v1347_v31  ;;  %v1332_v41 = vadd.f32 %v4528_v19, %v4563_v11 }
 0x325   : > { %3315 = vmatprep.subr.mxu0 %v1928_v2  ;;  %v2211_v10 = vmin.f32 %v4581_v3, 14.0  ;;  %v4590_v40 = vmul.f32 0.5, %v4584_v34  ;;  %v4593_v37 = vadd.f32 %v3383_v5, %v4571_v55  ;;  %v1902_v56 = vmul.f32 %v4548_v32, %v1342_v45 }
 0x326   : > { %3316 = vmatpush3.msra.mxu0 %v1928_v2  ;;  %v2125_v27 = vpop.f32.mrf.mxu1  ;;  %v1925_v2 = vadd.f32 %v1909_v57, %v4501_v22  ;;  %v1924_v22 = vadd.f32 %v1908_v18, %v4497_v29  ;;  %v1923_v29 = vadd.f32 %v1907_v48, %v4495_v35  ;;  %v1922_v35 = vadd.f32 %v1906_v42, %v4491_v52 }
 0x327   : > { %3317 = vmatprep.subr.mxu0 %v1927_v7  ;;  %v2244_v13 = vmul.f32 1.442695, %v2211_v10  ;;  %v2210_v8 = vmin.f32 %v4590_v40, 14.0  ;;  %v4599_v0 = vmul.f32 0.5, %v4593_v37  ;;  %v4604_v4 = vadd.f32 %v4571_v55, %v2125_v27 }
 0x328   : > { %3318 = vmatpush3.msra.mxu0 %v1927_v7  ;;  %v3386_v1 = vpop.f32.mrf.mxu1  ;;  %v1921_v52 = vadd.f32 %v1905_v46, %v4488_v21  ;;  %v1920_v21 = vadd.f32 %v1904_v50, %v4484_v61  ;;  %v1919_v61 = vadd.f32 %v1903_v20, %v4481_v49  ;;  %v1327_v19 = vadd.f32 %v4563_v11, %v4530_v54 }
 0x329   : > { %3319 = vmatprep.subr.mxu0 %v1926_v25  ;;  %3550 = vpow2.f32 %v2244_v13  ;;  %v2242_v38 = vmul.f32 1.442695, %v2210_v8  ;;  %v2213_v47 = vmin.f32 %v4599_v0, 14.0  ;;  %v4612_v53 = vmul.f32 0.5, %v4604_v4 }
 0x32a   : > { %3320 = vmatpush3.msra.mxu0 %v1926_v25  ;;  %v4615_v17 = vadd.f32 %v3386_v1, %v4571_v55  ;;  %v2135_v23 = vpop.f32.mrf.mxu1  ;;  %v1337_v1 = vadd.f32 %v4563_v11, %v4534_v58  ;;  %v1918_v49 = vadd.f32 %v1902_v56, %v4476_v43  ;;  %v1899_v31 = vmul.f32 %v4546_v28, %v1327_v19 }
 0x32b   : > { %3321 = vmatprep.subr.mxu0 %v1925_v2  ;;  %3552 = vpow2.f32 %v2242_v38  ;;  %v2248_v63 = vmul.f32 1.442695, %v2213_v47  ;;  %v4619_v62 = vadd.f32 %v4571_v55, %v2135_v23  ;;  %v2212_v51 = vmin.f32 %v4612_v53, 14.0 }
 0x32c   : > { %3322 = vmatpush3.msra.mxu0 %v1925_v2  ;;  %v4626_v24 = vmul.f32 0.5, %v4615_v17  ;;  %v3389_v15 = vpop.f32.mrf.mxu1  ;;  %v1901_v58 = vmul.f32 %v4550_v16, %v1337_v1  ;;  %v1900_v16 = vmul.f32 %v4544_v60, %v1332_v41  ;;  %vm2227_vm5 = vcmp.gt.f32.partialorder %v4581_v3, 14.0 }
 0x32d   : > { %3323 = vmatprep.subr.mxu0 %v1924_v22  ;;  %3554 = vpow2.f32 %v2248_v63  ;;  %v4630_v12 = vmul.f32 0.5, %v4619_v62  ;;  %v4633_v57 = vadd.f32 %v3389_v15, %v4571_v55  ;;  %v2246_v5 = vmul.f32 1.442695, %v2212_v51 }
 0x32e   : > { %3324 = vmatpush3.msra.mxu0 %v1924_v22  ;;  %v2215_v7 = vmin.f32 %v4626_v24, 14.0  ;;  %v2145_v10 = vpop.f32.mrf.mxu1  ;;  %v1917_v50 = vadd.f32 %v1901_v58, %v4473_v26  ;;  %vm2226_vm6 = vcmp.gt.f32.partialorder %v4590_v40, 14.0  ;;  %vm2229_vm8 = vcmp.gt.f32.partialorder %v4599_v0, 14.0 }
 0x32f   : > { %3325 = vmatprep.subr.mxu0 %v1923_v29  ;;  %v2214_v9 = vmin.f32 %v4630_v12, 14.0  ;;  %v4642_v18 = vmul.f32 0.5, %v4633_v57  ;;  %v4645_v27 = vadd.f32 %v4571_v55, %v2145_v10  ;;  %3556 = vpow2.f32 %v2246_v5 }
 0x330   : > { %3326 = vmatpush3.msra.mxu0 %v1923_v29  ;;  %v2252_v25 = vmul.f32 1.442695, %v2215_v7  ;;  %v3392_v13 = vpop.f32.mrf.mxu1  ;;  %v1916_v10 = vadd.f32 %v1900_v16, %v4469_v30  ;;  %vm2228_vm11 = vcmp.gt.f32.partialorder %v4612_v53, 14.0  ;;  %vm2231_vm13 = vcmp.gt.f32.partialorder %v4626_v24, 14.0 }
 0x331   : > { %3327 = vmatprep.subr.mxu0 %v1922_v35  ;;  %v2250_v8 = vmul.f32 1.442695, %v2214_v9  ;;  %v2217_v44 = vmin.f32 %v4642_v18, 14.0  ;;  %v4653_v48 = vmul.f32 0.5, %v4645_v27  ;;  %v4659_v14 = vadd.f32 %v3392_v13, %v4571_v55 }
 0x332   : > { %3328 = vmatpush3.msra.mxu0 %v1922_v35  ;;  %3558 = vpow2.f32 %v2252_v25  ;;  %v2155_v2 = vpop.f32.mrf.mxu1  ;;  %v1915_v13 = vadd.f32 %v1899_v31, %v4458_v39  ;;  %vm2230_vm14 = vcmp.gt.f32.partialorder %v4630_v12, 14.0  ;;  %vm2233_vm0 = vcmp.gt.f32.partialorder %v4642_v18, 14.0 }
 0x333   : > { %3329 = vmatprep.subr.mxu0 %v1921_v52  ;;  %3560 = vpow2.f32 %v2250_v8  ;;  %v2256_v38 = vmul.f32 1.442695, %v2217_v44  ;;  %v2216_v47 = vmin.f32 %v4653_v48, 14.0  ;;  %v4667_v32 = vmul.f32 0.5, %v4659_v14 }
 0x334   : > { %3330 = vmatpush3.msra.mxu0 %v1921_v52  ;;  %v4670_v42 = vadd.f32 %v4571_v55, %v2155_v2  ;;  %v3395_v23 = vpop.f32.mrf.mxu1 }
 0x335   : > { %3331 = vmatprep.subr.mxu0 %v1920_v21  ;;  %3562 = vpow2.f32 %v2256_v38  ;;  %v2254_v22 = vmul.f32 1.442695, %v2216_v47  ;;  %v4674_v63 = vadd.f32 %v3395_v23, %v4571_v55  ;;  %v2219_v46 = vmin.f32 %v4667_v32, 14.0 }
 0x336   : > { %v3551_v59 = vpop.eup %3550  ;;  %3332 = vmatpush3.msra.mxu0 %v1920_v21  ;;  %v4681_v51 = vmul.f32 0.5, %v4670_v42  ;;  %v5075_v23 = vmov 1.0  }
 0x337   : > { %3333 = vmatprep.subr.mxu0 %v1919_v61  ;;  %v2283_v15 = vadd.f32 1.0, %v3551_v59  ;;  %3564 = vpow2.f32 %v2254_v22  ;;  %v2260_v54 = vmul.f32 1.442695, %v2219_v46  ;;  %v2286_v11 = vmul.f32 -0.5, %v3551_v59 }
 0x338   : > { %v3553_v29 = vpop.eup %3552  ;;  %3334 = vmatpush3.msra.mxu0 %v1919_v61  ;;  %v2218_v60 = vmin.f32 %v4681_v51, 14.0  ;;  %v4688_v7 = vmul.f32 0.5, %v4674_v63  ;;  %v2289_v28 = vand.u32 2147483647, %v3551_v59 }
 0x339   : > { %3335 = vmatprep.subr.mxu0 %v1918_v49  ;;  %3566 = vlog2.f32 %v2283_v15  ;;  %v2274_v5 = vadd.f32 1.0, %v3553_v29  ;;  %v2277_v26 = vmul.f32 -0.5, %v3553_v29  ;;  %v2280_v45 = vand.u32 2147483647, %v3553_v29 }
 0x33a   : > { %v3555_v43 = vpop.eup %3554  ;;  %3336 = vmatpush3.msra.mxu0 %v1918_v49  ;;  %3568 = vpow2.f32 %v2260_v54  ;;  %v2258_v35 = vmul.f32 1.442695, %v2218_v60  ;;  %v2287_v52 = vadd.f32 1.0, %v2286_v11  ;;  %v2221_v30 = vmin.f32 %v4688_v7, 14.0 }
 0x33b   : > { %3337 = vmatprep.subr.mxu0 %v1917_v50  ;;  %3570 = vlog2.f32 %v2274_v5  ;;  %v2301_v9 = vadd.f32 1.0, %v3555_v43  ;;  %v2304_v20 = vmul.f32 -0.5, %v3555_v43  ;;  %vm4693_vm3 = vcmp.lt.f32.partialorder %v2289_v28, 0.0004427343 }
 0x33c   : > { %3338 = vmatpush3.msra.mxu0 %v1917_v50  ;;  %3572 = vpow2.f32 %v2258_v35  ;;  %v3557_v25 = vpop.eup %3556  ;;  %v2278_v2 = vadd.f32 1.0, %v2277_v26  ;;  %v2307_v21 = vand.u32 2147483647, %v3555_v43  ;;  %vm4697_vm4 = vcmp.lt.f32.partialorder %v2280_v45, 0.0004427343  ;;  %v2165_v50 = vpop.f32.mrf.mxu1 }
 0x33d   : > { %3339 = vmatprep.subr.mxu0 %v1916_v10  ;;  %3574 = vlog2.f32 %v2301_v9  ;;  %v2292_v8 = vadd.f32 1.0, %v3557_v25  ;;  %v2295_v44 = vmul.f32 -0.5, %v3557_v25  ;;  %v2305_v47 = vadd.f32 1.0, %v2304_v20 }
 0x33e   : > { %3340 = vmatpush3.msra.mxu0 %v1916_v10  ;;  %v2288_v61 = vmul.f32 %v3551_v59, %v2287_v52  ;;  %v2298_v22 = vand.u32 2147483647, %v3557_v25  ;;  %v2264_v16 = vmul.f32 1.442695, %v2221_v30  ;;  %v2279_v54 = vmul.f32 %v3553_v29, %v2278_v2 }
 0x33f   : > { %v3559_v1 = vpop.eup %3558  ;;  %3341 = vmatprep.subr.mxu0 %v1915_v13  ;;  %3576 = vlog2.f32 %v2292_v8  ;;  %v2296_v49 = vadd.f32 1.0, %v2295_v44  ;;  %v2306_v36 = vmul.f32 %v3555_v43, %v2305_v47  ;;  %vm4709_vm7 = vcmp.lt.f32.partialorder %v2307_v21, 0.0004427343  ;;  %v3398_v44 = vpop.f32.mrf.mxu1 }
 0x340   : > { %v3561_v38 = vpop.eup %3560  ;;  %3342 = vmatpush3.msra.mxu0 %v1915_v13  ;;  %v2319_v41 = vadd.f32 1.0, %v3559_v1  ;;  %v2322_v58 = vmul.f32 -0.5, %v3559_v1  ;;  %v2325_v60 = vand.u32 2147483647, %v3559_v1  ;;  %vm4714_vm9 = vcmp.lt.f32.partialorder %v2298_v22, 0.0004427343 }
 0x341   : > { %3344 = vmatmul.mubr.msk.f32.vlgmr.msra.gmra.mxu0 %vm1940_vm2, %v5075_v23  ;;  %v2310_v19 = vadd.f32 1.0, %v3561_v38  ;;  %v2313_v31 = vmul.f32 -0.5, %v3561_v38  ;;  %v2316_v5 = vand.u32 2147483647, %v3561_v38  ;;  %v4720_v28 = vadd.f32 %v4571_v55, %v2165_v50 }
 0x342   : > { %v3563_v46 = vpop.eup %3562  ;;  %3578 = vlog2.f32 %v2319_v41  ;;  %v2323_v15 = vadd.f32 1.0, %v2322_v58  ;;  %v4722_v43 = vmul.f32 %v3557_v25, %v2296_v49  ;;  %vm4728_vm10 = vcmp.lt.f32.partialorder %v2325_v60, 0.0004427343 }
 0x343   : > { %3580 = vlog2.f32 %v2310_v19  ;;  %v2337_v11 = vadd.f32 1.0, %v3563_v46  ;;  %v2340_v10 = vmul.f32 -0.5, %v3563_v46  ;;  %v2314_v45 = vadd.f32 1.0, %v2313_v31 }
 0x344   : > { %v4707_v6 = vpop.eup %3564  ;;  %v4724_v9 = vmul.f32 %v3559_v1, %v2323_v15  ;;  %v2343_v30 = vand.u32 2147483647, %v3563_v46  ;;  %vm4734_vm12 = vcmp.lt.f32.partialorder %v2316_v5, 0.0004427343  ;;  %v4746_v19 = vmul.f32 0.5, %v4720_v28 }
 0x345   : > { %3582 = vlog2.f32 %v2337_v11  ;;  %v2328_v29 = vadd.f32 1.0, %v4707_v6  ;;  %v2331_v8 = vmul.f32 -0.5, %v4707_v6  ;;  %v2341_v1 = vadd.f32 1.0, %v2340_v10  ;;  %v2175_v11 = vpop.f32.mrf.mxu1 }
 0x346   : > { %v3567_v26 = vpop.eup %3566  ;;  %3584 = vpow2.f32 %v2264_v16  ;;  %v2334_v21 = vand.u32 2147483647, %v4707_v6  ;;  %v2315_v15 = vmul.f32 %v3561_v38, %v2314_v45  ;;  %vm4753_vm15 = vcmp.lt.f32.partialorder %v2343_v30, 0.0004427343 }
 0x347   : > { %v4726_v20 = vpop.eup %3568  ;;  %v2285_v13 = vmul.f32 0.6931472, %v3567_v26  ;;  %3586 = vlog2.f32 %v2328_v29  ;;  %v2332_v60 = vadd.f32 1.0, %v2331_v8  ;;  %v2342_v10 = vmul.f32 %v3563_v46, %v2341_v1  ;;  %v3401_v1 = vpop.f32.mrf.mxu1 }
 0x348   : > { %v3571_v2 = vpop.eup %3570  ;;  %v2355_v47 = vadd.f32 1.0, %v4726_v20  ;;  %v2358_v22 = vmul.f32 -0.5, %v4726_v20  ;;  %vm4764_vm1 = vcmp.lt.f32.partialorder %v2334_v21, 0.0004427343  ;;  %v2220_v45 = vmin.f32 %v4746_v19, 14.0 }
 0x349   : > { %v4740_v41 = vpop.eup %3572  ;;  %v2291_v58 = vsel %vm4693_vm3, %v2288_v61, %v2285_v13  ;;  %v2276_v23 = vmul.f32 0.6931472, %v3571_v2  ;;  %vm2232_vm2 = vcmp.gt.f32.partialorder %v4653_v48, 14.0  ;;  %v2361_v30 = vand.u32 2147483647, %v4726_v20 }
 0x34a   : > { %v3575_v16 = vpop.eup %3574  ;;  %v2419_v49 = vmul.f32 2.0, %v2291_v58  ;;  %3588 = vlog2.f32 %v2355_v47  ;;  %v2346_v31 = vadd.f32 1.0, %v4740_v41  ;;  %v2359_v26 = vadd.f32 1.0, %v2358_v22 }
 0x34b   : > { %v2282_v50 = vsel %vm4697_vm4, %v2279_v54, %v2276_v23  ;;  %v2303_v56 = vmul.f32 0.6931472, %v3575_v16  ;;  %v2349_v13 = vmul.f32 -0.5, %v4740_v41  ;;  %v2262_v8 = vmul.f32 1.442695, %v2220_v45 }
 0x34c   : > { %v2435_v5 = vsel %vm2227_vm5, %v4576_v33, %v2419_v49  ;;  %v2418_v38 = vmul.f32 2.0, %v2282_v50  ;;  %3590 = vlog2.f32 %v2346_v31  ;;  %v3577_v29 = vpop.eup %3576  ;;  %v4778_v2 = vadd.f32 %v3398_v44, %v4571_v55 }
 0x34d   : > { %2451 = vst [vmem:[%s3776_s2 + $0x8] sm:$0xff] %v2435_v5  ;;  %v2309_v39 = vsel %vm4709_vm7, %v2306_v36, %v2303_v56  ;;  %v2294_v46 = vmul.f32 0.6931472, %v3577_v29  ;;  %v2333_v36 = vmul.f32 %v4707_v6, %v2332_v60  ;;  %v4787_v58 = vadd.f32 %v4571_v55, %v2175_v11 }
 0x34e   : > { %v2434_v33 = vsel %vm2226_vm6, %v4584_v34, %v2418_v38  ;;  %v2421_v3 = vmul.f32 2.0, %v2309_v39  ;;  %3592 = vpow2.f32 %v2262_v8  ;;  %v4791_v44 = vmul.f32 0.5, %v4778_v2 }
 0x34f   : > { %v3579_v59 = vpop.eup %3578  ;;  %2450 = vst [vmem:[%s3776_s2] sm:$0xff] %v2434_v33  ;;  %v2300_v21 = vsel %vm4714_vm9, %v4722_v43, %v2294_v46  ;;  %vm2235_vm3 = vcmp.gt.f32.partialorder %v4667_v32, 14.0  ;;  %v2360_v0 = vmul.f32 %v4726_v20, %v2359_v26  ;;  %v2350_v35 = vadd.f32 1.0, %v2349_v13 }
 0x350   : > { %v3581_v40 = vpop.eup %3580  ;;  %v2437_v34 = vsel %vm2229_vm8, %v4593_v37, %v2421_v3  ;;  %v2321_v47 = vmul.f32 0.6931472, %v3579_v59  ;;  %v2420_v6 = vmul.f32 2.0, %v2300_v21  ;;  %v2352_v43 = vand.u32 2147483647, %v4740_v41 }
 0x351   : > { %2453 = vst [vmem:[%s3776_s2 + $0x18] sm:$0xff] %v2437_v34  ;;  %v2312_v23 = vmul.f32 0.6931472, %v3581_v40  ;;  %v4809_v11 = vmul.f32 0.5, %v4787_v58  ;;  %v4812_v5 = vadd.f32 %v3401_v1, %v4571_v55  ;;  %vm4830_vm4 = vcmp.lt.f32.partialorder %v2361_v30, 0.0004427343 }
 0x352   : > { %v3583_v22 = vpop.eup %3582  ;;  %v2327_v37 = vsel %vm4728_vm10, %v4724_v9, %v2321_v47  ;;  %v2436_v49 = vsel %vm2228_vm11, %v4604_v4, %v2420_v6  ;;  %v2185_v9 = vpop.f32.mrf.mxu1  ;;  %v2351_v61 = vmul.f32 %v4740_v41, %v2350_v35  ;;  %vm4838_vm5 = vcmp.lt.f32.partialorder %v2352_v43, 0.0004427343 }
 0x353   : > { %v4799_v16 = vpop.eup %3584  ;;  %v2423_v31 = vmul.f32 2.0, %v2327_v37  ;;  %v2318_v50 = vsel %vm4734_vm12, %v2315_v15, %v2312_v23  ;;  %v2339_v52 = vmul.f32 0.6931472, %v3583_v22  ;;  %2452 = vst [vmem:[%s3776_s2 + $0x10] sm:$0xff] %v2436_v49  ;;  %v2223_v15 = vmin.f32 %v4791_v44, 14.0 }
 0x354   : > { %v3587_v56 = vpop.eup %3586  ;;  %v2422_v20 = vmul.f32 2.0, %v2318_v50  ;;  %v2373_v60 = vadd.f32 1.0, %v4799_v16  ;;  %v4825_v39 = vadd.f32 %v4571_v55, %v2185_v9  ;;  %v2376_v33 = vmul.f32 -0.5, %v4799_v16 }
 0x355   : > { %v2439_v4 = vsel %vm2231_vm13, %v4615_v17, %v2423_v31  ;;  %v2345_v53 = vsel %vm4753_vm15, %v2342_v10, %v2339_v52  ;;  %v2330_v25 = vmul.f32 0.6931472, %v3587_v56  ;;  %v2268_v12 = vmul.f32 1.442695, %v2223_v15 }
 0x356   : > { %2455 = vst [vmem:[%s3776_s2 + $0x28] sm:$0xff] %v2439_v4  ;;  %v2438_v38 = vsel %vm2230_vm14, %v4619_v62, %v2422_v20  ;;  %v2425_v29 = vmul.f32 2.0, %v2345_v53  ;;  %3594 = vlog2.f32 %v2373_v60  ;;  %v2222_v3 = vmin.f32 %v4809_v11, 14.0 }
 0x357   : > { %v3589_v26 = vpop.eup %3588  ;;  %2454 = vst [vmem:[%s3776_s2 + $0x20] sm:$0xff] %v2438_v38  ;;  %v2336_v17 = vsel %vm4764_vm1, %v2333_v36, %v2330_v25  ;;  %3596 = vpow2.f32 %v2268_v12  ;;  %v4846_v41 = vmul.f32 0.5, %v4812_v5  ;;  %v4854_v13 = vmul.f32 0.5, %v4825_v39 }
 0x358   : > { %v2441_v62 = vsel %vm2233_vm0, %v4633_v57, %v2425_v29  ;;  %v2424_v10 = vmul.f32 2.0, %v2336_v17  ;;  %v2357_v55 = vmul.f32 0.6931472, %v3589_v26  ;;  %v2266_v36 = vmul.f32 1.442695, %v2222_v3 }
 0x359   : > { %v3591_v54 = vpop.eup %3590  ;;  %2457 = vst [vmem:[%s3776_s2 + $0x38] sm:$0xff] %v2441_v62  ;;  %v2225_v30 = vmin.f32 %v4846_v41, 14.0  ;;  %vm2234_vm6 = vcmp.gt.f32.partialorder %v4681_v51, 14.0  ;;  %v2377_v21 = vadd.f32 1.0, %v2376_v33  ;;  %v2379_v51 = vand.u32 2147483647, %v4799_v16 }
 0x35a   : > { %v2440_v57 = vsel %vm2232_vm2, %v4645_v27, %v2424_v10  ;;  %v2363_v18 = vsel %vm4830_vm4, %v2360_v0, %v2357_v55  ;;  %v2348_v46 = vmul.f32 0.6931472, %v3591_v54  ;;  %v2224_v27 = vmin.f32 %v4854_v13, 14.0 }
 0x35b   : > { %2456 = vst [vmem:[%s3776_s2 + $0x30] sm:$0xff] %v2440_v57  ;;  %v2427_v59 = vmul.f32 2.0, %v2363_v18  ;;  %3598 = vpow2.f32 %v2266_v36  ;;  %v2272_v40 = vmul.f32 1.442695, %v2225_v30  ;;  %v3593_v34 = vpop.eup %3592  ;;  %v2378_v22 = vmul.f32 %v4799_v16, %v2377_v21 }
 0x35c   : > { %v2354_v48 = vsel %vm4838_vm5, %v2351_v61, %v2348_v46  ;;  %v2270_v47 = vmul.f32 1.442695, %v2224_v27  ;;  %v2364_v23 = vadd.f32 1.0, %v3593_v34  ;;  %vm2380_vm7 = vcmp.lt.f32.partialorder %v2379_v51, 0.0004427343 }
 0x35d   : > { %v2443_v8 = vsel %vm2235_vm3, %v4659_v14, %v2427_v59  ;;  %v2426_v1 = vmul.f32 2.0, %v2354_v48  ;;  %3600 = vpow2.f32 %v2272_v40  ;;  %v2367_v37 = vmul.f32 -0.5, %v3593_v34 }
 0x35e   : > { %2459 = vst [vmem:[%s3776_s2 + $0x48] sm:$0xff] %v2443_v8  ;;  %3602 = vlog2.f32 %v2364_v23  ;;  %vm2237_vm8 = vcmp.gt.f32.partialorder %v4688_v7, 14.0  ;;  %v2370_v52 = vand.u32 2147483647, %v3593_v34  ;;  %vm2236_vm10 = vcmp.gt.f32.partialorder %v4746_v19, 14.0 }
 0x35f   : > { %v2442_v6 = vsel %vm2234_vm6, %v4670_v42, %v2426_v1  ;;  %3604 = vpow2.f32 %v2270_v47  ;;  %v2368_v31 = vadd.f32 1.0, %v2367_v37  ;;  %vm2239_vm12 = vcmp.gt.f32.partialorder %v4791_v44, 14.0 }
 0x360   : > { %2458 = vst [vmem:[%s3776_s2 + $0x40] sm:$0xff] %v2442_v6  ;;  %vm2371_vm9 = vcmp.lt.f32.partialorder %v2370_v52, 0.0004427343  ;;  %vm2238_vm14 = vcmp.gt.f32.partialorder %v4809_v11, 14.0  ;;  %vm2241_vm1 = vcmp.gt.f32.partialorder %v4846_v41, 14.0  ;;  %vm2240_vm2 = vcmp.gt.f32.partialorder %v4854_v13, 14.0 }
 0x361   : > { %v2369_v56 = vmul.f32 %v3593_v34, %v2368_v31 }
 0x363   : > { %v3595_v14 = vpop.eup %3594 }
 0x364   : > { %v2375_v32 = vmul.f32 0.6931472, %v3595_v14  ;;  %v3597_v0 = vpop.eup %3596 }
 0x365   : > { %v2391_v42 = vadd.f32 1.0, %v3597_v0  ;;  %v2394_v20 = vmul.f32 -0.5, %v3597_v0  ;;  %v2397_v26 = vand.u32 2147483647, %v3597_v0 }
 0x366   : > { %v2381_v35 = vsel %vm2380_vm7, %v2378_v22, %v2375_v32  ;;  %v1946_v22 = vld [vmem:[#allocation3] sm:$0xff]  ;;  %v1945_v32 = vld [vmem:[#allocation3 + $0x8] sm:$0xff] }
 0x367   : > { %v2429_v43 = vmul.f32 2.0, %v2381_v35  ;;  %3606 = vlog2.f32 %v2391_v42  ;;  %v2395_v15 = vadd.f32 1.0, %v2394_v20  ;;  %vm2398_vm11 = vcmp.lt.f32.partialorder %v2397_v26, 0.0004427343 }
 0x368   : > { %v3599_v50 = vpop.eup %3598 }
 0x369   : > { %v2445_v49 = vsel %vm2237_vm8, %v4674_v63, %v2429_v43  ;;  %v2382_v9 = vadd.f32 1.0, %v3599_v50  ;;  %v2385_v38 = vmul.f32 -0.5, %v3599_v50  ;;  %v2396_v61 = vmul.f32 %v3597_v0, %v2395_v15 }
 0x36a   : > { %2461 = vst [vmem:[%s3776_s2 + $0x58] sm:$0xff] %v2445_v49  ;;  %v3601_v16 = vpop.eup %3600  ;;  %v2388_v10 = vand.u32 2147483647, %v3599_v50 }
 0x36b   : > { %3608 = vlog2.f32 %v2382_v9  ;;  %v3603_v60 = vpop.eup %3602  ;;  %v2409_v4 = vadd.f32 1.0, %v3601_v16  ;;  %v2412_v24 = vmul.f32 -0.5, %v3601_v16  ;;  %v2386_v12 = vadd.f32 1.0, %v2385_v38 }
 0x36c   : > { %v3605_v7 = vpop.eup %3604  ;;  %v2366_v53 = vmul.f32 0.6931472, %v3603_v60  ;;  %v2415_v3 = vand.u32 2147483647, %v3601_v16  ;;  %vm2389_vm13 = vcmp.lt.f32.partialorder %v2388_v10, 0.0004427343 }
 0x36d   : > { %3610 = vlog2.f32 %v2409_v4  ;;  %v2400_v25 = vadd.f32 1.0, %v3605_v7  ;;  %v2403_v55 = vmul.f32 -0.5, %v3605_v7  ;;  %v2413_v54 = vadd.f32 1.0, %v2412_v24 }
 0x36e   : > { %v2372_v63 = vsel %vm2371_vm9, %v2369_v56, %v2366_v53  ;;  %v2387_v33 = vmul.f32 %v3599_v50, %v2386_v12  ;;  %v2406_v59 = vand.u32 2147483647, %v3605_v7  ;;  %vm2416_vm15 = vcmp.lt.f32.partialorder %v2415_v3, 0.0004427343 }
 0x36f   : > { %v2428_v29 = vmul.f32 2.0, %v2372_v63  ;;  %3612 = vlog2.f32 %v2400_v25  ;;  %v2414_v30 = vmul.f32 %v3601_v16, %v2413_v54 }
 0x370   : > { %vm2407_vm0 = vcmp.lt.f32.partialorder %v2406_v59, 0.0004427343 }
 0x371   : > { %v2444_v17 = vsel %vm2236_vm10, %v4720_v28, %v2428_v29  ;;  %v2404_v28 = vadd.f32 1.0, %v2403_v55 }
 0x372   : > { %2460 = vst [vmem:[%s3776_s2 + $0x50] sm:$0xff] %v2444_v17 }
 0x373   : > { %v2405_v1 = vmul.f32 %v3605_v7, %v2404_v28 }
 0x374   : > { %v3607_v62 = vpop.eup %3606 }
 0x375   : > { %v2393_v45 = vmul.f32 0.6931472, %v3607_v62 }
 0x377   : > { %v2399_v19 = vsel %vm2398_vm11, %v2396_v61, %v2393_v45 }
 0x378   : > { %v3609_v57 = vpop.eup %3608  ;;  %v2431_v18 = vmul.f32 2.0, %v2399_v19 }
 0x379   : > { %v2384_v46 = vmul.f32 0.6931472, %v3609_v57 }
 0x37a   : > { %v2447_v36 = vsel %vm2239_vm12, %v4778_v2, %v2431_v18  ;;  %v3611_v48 = vpop.eup %3610 }
 0x37b   : > { %2463 = vst [vmem:[%s3776_s2 + $0x68] sm:$0xff] %v2447_v36  ;;  %v2390_v27 = vsel %vm2389_vm13, %v2387_v33, %v2384_v46  ;;  %v2411_v8 = vmul.f32 0.6931472, %v3611_v48 }
 0x37c   : > { %v2430_v44 = vmul.f32 2.0, %v2390_v27  ;;  %v3613_v40 = vpop.eup %3612 }
 0x37d   : > { %v2417_v2 = vsel %vm2416_vm15, %v2414_v30, %v2411_v8  ;;  %v2402_v21 = vmul.f32 0.6931472, %v3613_v40 }
 0x37e   : > { %v2446_v34 = vsel %vm2238_vm14, %v4787_v58, %v2430_v44  ;;  %v2433_v47 = vmul.f32 2.0, %v2417_v2 }
 0x37f   : > { %2462 = vst [vmem:[%s3776_s2 + $0x60] sm:$0xff] %v2446_v34  ;;  %v2408_v11 = vsel %vm2407_vm0, %v2405_v1, %v2402_v21 }
 0x380   : > { %v2449_v6 = vsel %vm2241_vm1, %v4812_v5, %v2433_v47  ;;  %v2432_v51 = vmul.f32 2.0, %v2408_v11 }
 0x381   : > { %2465 = vst [vmem:[%s3776_s2 + $0x78] sm:$0xff] %v2449_v6 }
 0x382   : > { %v2448_v23 = vsel %vm2240_vm2, %v4825_v39, %v2432_v51 }
 0x383   : > { %2464 = vst [vmem:[%s3776_s2 + $0x70] sm:$0xff] %v2448_v23 }
 0x401   : > { %v3345_v14 = vpop.f32.mrf.mxu0 }
 0x402   : > { %v2023_v58 = vadd.f32 %v3345_v14, %v1946_v22  ;;  %2469 = sbr.rel (%p2857_p6) target bundleno = 1504 (0x5e0), region = 104 }
 0x403   : > { %v2013_v37 = vpop.f32.mrf.mxu0 }
 0x404   : > { %2025 = vst [vmem:[#allocation3] sm:$0xff] %v2023_v58  ;;  %v2022_v41 = vadd.f32 %v2013_v37, %v1945_v32 }
 0x406   : > { %2024 = vst [vmem:[#allocation3 + $0x8] sm:$0xff] %v2022_v41 }
 0x407   : > { %v2487_v5 = vld [vmem:[%s5092_s25 + $0x78] sm:$0xff]  ;;  %v2486_v39 = vld [vmem:[%s5092_s25 + $0x70] sm:$0xff]  ;;  %v2485_v13 = vld [vmem:[%s5092_s25 + $0x68] sm:$0xff] }
 0x408   : > { %3402 = vmatprep.subr.mxu0 %v2487_v5  ;;  %v2484_v0 = vld [vmem:[%s5092_s25 + $0x60] sm:$0xff]  ;;  %v2483_v43 = vld [vmem:[%s5092_s25 + $0x58] sm:$0xff]  ;;  %v2482_v42 = vld [vmem:[%s5092_s25 + $0x50] sm:$0xff] }
 0x409   : > { %3403 = vmatpush3.msra.mxu0 %v2487_v5  ;;  %v2481_v49 = vld [vmem:[%s5092_s25 + $0x48] sm:$0xff]  ;;  %v2480_v31 = vld [vmem:[%s5092_s25 + $0x40] sm:$0xff]  ;;  %v2479_v50 = vld [vmem:[%s5092_s25 + $0x38] sm:$0xff] }
 0x40a   : > { %3404 = vmatprep.subr.mxu0 %v2486_v39  ;;  %v2478_v52 = vld [vmem:[%s5092_s25 + $0x30] sm:$0xff]  ;;  %v2477_v9 = vld [vmem:[%s5092_s25 + $0x28] sm:$0xff]  ;;  %v2476_v16 = vld [vmem:[%s5092_s25 + $0x20] sm:$0xff] }
 0x40b   : > { %3405 = vmatpush3.msra.mxu0 %v2486_v39  ;;  %v2475_v56 = vld [vmem:[%s5092_s25 + $0x18] sm:$0xff]  ;;  %v2474_v20 = vld [vmem:[%s5092_s25 + $0x10] sm:$0xff]  ;;  %v2473_v60 = vld [vmem:[%s5092_s25 + $0x8] sm:$0xff] }
 0x40c   : > { %3406 = vmatprep.subr.mxu0 %v2485_v13  ;;  %v2472_v4 = vld [vmem:[%s5092_s25] sm:$0xff]  ;;  %v2471_v7 = vld [vmem:[#allocation3] sm:$0xff]  ;;  %v2617_v53 = vld [vmem:[%s5093_s19 + $0x78] sm:$0xff] }
 0x40d   : > { %v2470_v35 = vld [vmem:[#allocation3 + $0x8] sm:$0xff]  ;;  %3407 = vmatpush3.msra.mxu0 %v2485_v13  ;;  %v2616_v25 = vld [vmem:[%s5093_s19 + $0x70] sm:$0xff]  ;;  %3437 = vmatprep.subr.mxu1 %v2617_v53  ;;  %v2615_v63 = vld [vmem:[%s5093_s19 + $0x68] sm:$0xff] }
 0x40e   : > { %3434 = vmatprep.mubr.f32.mxu0 %v2470_v35  ;;  %3408 = vmatprep.subr.mxu0 %v2484_v0  ;;  %v2614_v15 = vld [vmem:[%s5093_s19 + $0x60] sm:$0xff]  ;;  %v2613_v38 = vld [vmem:[%s5093_s19 + $0x58] sm:$0xff]  ;;  %v2612_v29 = vld [vmem:[%s5093_s19 + $0x50] sm:$0xff] }
 0x40f   : > { %3409 = vmatpush3.msra.mxu0 %v2484_v0  ;;  %3438 = vmatpush3.msra.mxu1 %v2617_v53  ;;  %v2611_v26 = vld [vmem:[%s5093_s19 + $0x48] sm:$0xff]  ;;  %v2610_v17 = vld [vmem:[%s5093_s19 + $0x40] sm:$0xff]  ;;  %v2609_v24 = vld [vmem:[%s5093_s19 + $0x38] sm:$0xff] }
 0x410   : > { %3410 = vmatprep.subr.mxu0 %v2483_v43  ;;  %3439 = vmatprep.subr.mxu1 %v2616_v25  ;;  %v2608_v61 = vld [vmem:[%s5093_s19 + $0x30] sm:$0xff]  ;;  %v2607_v12 = vld [vmem:[%s5093_s19 + $0x28] sm:$0xff]  ;;  %v2606_v62 = vld [vmem:[%s5093_s19 + $0x20] sm:$0xff] }
 0x411   : > { %3411 = vmatpush3.msra.mxu0 %v2483_v43  ;;  %3440 = vmatpush3.msra.mxu1 %v2616_v25  ;;  %v2605_v10 = vld [vmem:[%s5093_s19 + $0x18] sm:$0xff]  ;;  %v2604_v55 = vld [vmem:[%s5093_s19 + $0x10] sm:$0xff]  ;;  %v2603_v45 = vld [vmem:[%s5093_s19 + $0x8] sm:$0xff] }
 0x412   : > { %3412 = vmatprep.subr.mxu0 %v2482_v42  ;;  %3441 = vmatprep.subr.mxu1 %v2615_v63  ;;  %v2602_v54 = vld [vmem:[%s5093_s19] sm:$0xff]  ;;  %v2701_v43 = vld [vmem:[%s5096_s18 + $0x8] sm:$0xff] }
 0x413   : > { %3413 = vmatpush3.msra.mxu0 %v2482_v42  ;;  %3442 = vmatpush3.msra.mxu1 %v2615_v63  ;;  %v2858_v19 = vld [vmem:[%s5094_s14] ss:$0 sm:$0xff] }
 0x414   : > { %3414 = vmatprep.subr.mxu0 %v2481_v49  ;;  %3443 = vmatprep.subr.mxu1 %v2614_v15  ;;  %v2859_v0 = vld [vmem:[%s5095_s22] ss:$0 sm:$0xff] }
 0x415   : > { %3415 = vmatpush3.msra.mxu0 %v2481_v49  ;;  %3444 = vmatpush3.msra.mxu1 %v2614_v15 }
 0x416   : > { %3416 = vmatprep.subr.mxu0 %v2480_v31  ;;  %3445 = vmatprep.subr.mxu1 %v2613_v38 }
 0x417   : > { %3417 = vmatpush3.msra.mxu0 %v2480_v31  ;;  %3446 = vmatpush3.msra.mxu1 %v2613_v38  ;;  %v2700_v31 = vld [vmem:[%s5096_s18] sm:$0xff] }
 0x418   : > { %3418 = vmatprep.subr.mxu0 %v2479_v50  ;;  %3447 = vmatprep.subr.mxu1 %v2612_v29 }
 0x419   : > { %3419 = vmatpush3.msra.mxu0 %v2479_v50  ;;  %3448 = vmatpush3.msra.mxu1 %v2612_v29 }
 0x41a   : > { %3420 = vmatprep.subr.mxu0 %v2478_v52  ;;  %3449 = vmatprep.subr.mxu1 %v2611_v26 }
 0x41b   : > { %3421 = vmatpush3.msra.mxu0 %v2478_v52  ;;  %3450 = vmatpush3.msra.mxu1 %v2611_v26 }
 0x41c   : > { %3422 = vmatprep.subr.mxu0 %v2477_v9  ;;  %3451 = vmatprep.subr.mxu1 %v2610_v17 }
 0x41d   : > { %3423 = vmatpush3.msra.mxu0 %v2477_v9  ;;  %3452 = vmatpush3.msra.mxu1 %v2610_v17 }
 0x41e   : > { %3424 = vmatprep.subr.mxu0 %v2476_v16  ;;  %3453 = vmatprep.subr.mxu1 %v2609_v24 }
 0x41f   : > { %3425 = vmatpush3.msra.mxu0 %v2476_v16  ;;  %3454 = vmatpush3.msra.mxu1 %v2609_v24 }
 0x420   : > { %3426 = vmatprep.subr.mxu0 %v2475_v56  ;;  %3455 = vmatprep.subr.mxu1 %v2608_v61 }
 0x421   : > { %3427 = vmatpush3.msra.mxu0 %v2475_v56  ;;  %3456 = vmatpush3.msra.mxu1 %v2608_v61 }
 0x422   : > { %3428 = vmatprep.subr.mxu0 %v2474_v20  ;;  %3457 = vmatprep.subr.mxu1 %v2607_v12 }
 0x423   : > { %3429 = vmatpush3.msra.mxu0 %v2474_v20  ;;  %3458 = vmatpush3.msra.mxu1 %v2607_v12 }
 0x424   : > { %3430 = vmatprep.subr.mxu0 %v2473_v60  ;;  %3459 = vmatprep.subr.mxu1 %v2606_v62 }
 0x425   : > { %3431 = vmatpush3.msra.mxu0 %v2473_v60  ;;  %3460 = vmatpush3.msra.mxu1 %v2606_v62 }
 0x426   : > { %3432 = vmatprep.subr.mxu0 %v2472_v4  ;;  %3461 = vmatprep.subr.mxu1 %v2605_v10 }
 0x427   : > { %3433 = vmatpush3.msra.mxu0 %v2472_v4  ;;  %3462 = vmatpush3.msra.mxu1 %v2605_v10 }
 0x428   : > { %3435 = vmatmul.mubr.f32.vlgmr.msra.gmra.mxu0 %v2471_v7  ;;  %3463 = vmatprep.subr.mxu1 %v2604_v55 }
 0x429   : > { %3464 = vmatpush3.msra.mxu1 %v2604_v55 }
 0x42a   : > { %3465 = vmatprep.subr.mxu1 %v2603_v45 }
 0x42b   : > { %3466 = vmatpush3.msra.mxu1 %v2603_v45 }
 0x42c   : > { %3467 = vmatprep.subr.mxu1 %v2602_v54 }
 0x42d   : > { %3468 = vmatpush3.msra.mxu1 %v2602_v54 }
 0x4e8   : > { %v3436_v33 = vpop.f32.mrf.mxu0 }
 0x4e9   : > { %v2567_v3 = vadd.f32 %v3436_v33, %v2858_v19 }
 0x4ea   : > { %v2561_v57 = vpop.f32.mrf.mxu0 }
 0x4eb   : > { %v2571_v18 = vmul.f32 0.5, %v2567_v3  ;;  %v2562_v28 = vadd.f32 %v2858_v19, %v2561_v57 }
 0x4ed   : > { %v2573_v46 = vmin.f32 %v2571_v18, 14.0  ;;  %v2570_v59 = vmul.f32 0.5, %v2562_v28  ;;  %vm2575_vm6 = vcmp.gt.f32.partialorder %v2571_v18, 14.0 }
 0x4ef   : > { %v2578_v36 = vmul.f32 1.442695, %v2573_v46  ;;  %v2572_v30 = vmin.f32 %v2570_v59, 14.0  ;;  %vm2574_vm5 = vcmp.gt.f32.partialorder %v2570_v59, 14.0 }
 0x4f1   : > { %3614 = vpow2.f32 %v2578_v36  ;;  %v2576_v48 = vmul.f32 1.442695, %v2572_v30 }
 0x4f3   : > { %3616 = vpow2.f32 %v2576_v48 }
 0x4fe   : > { %v3615_v27 = vpop.eup %3614 }
 0x4ff   : > { %v2589_v44 = vadd.f32 1.0, %v3615_v27  ;;  %v2592_v40 = vmul.f32 -0.5, %v3615_v27  ;;  %v2595_v21 = vand.u32 2147483647, %v3615_v27 }
 0x500   : > { %v3617_v8 = vpop.eup %3616 }
 0x501   : > { %v2580_v1 = vadd.f32 1.0, %v3617_v8  ;;  %3618 = vlog2.f32 %v2589_v44  ;;  %v2583_v34 = vmul.f32 -0.5, %v3617_v8  ;;  %v2593_v2 = vadd.f32 1.0, %v2592_v40 }
 0x502   : > { %v2586_v6 = vand.u32 2147483647, %v3617_v8  ;;  %vm2596_vm3 = vcmp.lt.f32.partialorder %v2595_v21, 0.0004427343 }
 0x503   : > { %3620 = vlog2.f32 %v2580_v1  ;;  %v2584_v47 = vadd.f32 1.0, %v2583_v34  ;;  %v2594_v23 = vmul.f32 %v3615_v27, %v2593_v2 }
 0x504   : > { %vm2587_vm4 = vcmp.lt.f32.partialorder %v2586_v6, 0.0004427343 }
 0x505   : > { %v2585_v32 = vmul.f32 %v3617_v8, %v2584_v47 }
 0x50e   : > { %v3619_v11 = vpop.eup %3618 }
 0x50f   : > { %v2591_v51 = vmul.f32 0.6931472, %v3619_v11 }
 0x510   : > { %v3621_v22 = vpop.eup %3620 }
 0x511   : > { %v2582_v14 = vmul.f32 0.6931472, %v3621_v22  ;;  %v2597_v58 = vsel %vm2596_vm3, %v2594_v23, %v2591_v51 }
 0x512   : > { %v2599_v41 = vmul.f32 2.0, %v2597_v58 }
 0x513   : > { %v2588_v37 = vsel %vm2587_vm4, %v2585_v32, %v2582_v14 }
 0x514   : > { %v2598_v5 = vmul.f32 2.0, %v2588_v37  ;;  %v2601_v13 = vsel %vm2575_vm6, %v2567_v3, %v2599_v41 }
 0x516   : > { %v2600_v39 = vsel %vm2574_vm5, %v2562_v28, %v2598_v5 }
 0x517   : > { %3469 = vmatprep.mubr.f32.mxu1 %v2600_v39 }
 0x518   : > { %3470 = vmatmul.mubr.f32.vlgmr.msra.gmra.mxu1 %v2601_v13 }
 0x5d8   : > { %v3471_v35 = vpop.f32.mrf.mxu1 }
 0x5d9   : > { %v2697_v42 = vadd.f32 %v3471_v35, %v2859_v0 }
 0x5da   : > { %v2691_v49 = vpop.f32.mrf.mxu1 }
 0x5db   : > { %v2703_v50 = vadd.f32 %v2701_v43, %v2697_v42  ;;  %v2692_v52 = vadd.f32 %v2859_v0, %v2691_v49 }
 0x5dd   : > { %2705 = vst [vmem:[%s5097_s4 + $0x8] sm:$0xff] %v2703_v50  ;;  %v2702_v9 = vadd.f32 %v2700_v31, %v2692_v52 }
 0x5df   : > { %2704 = vst [vmem:[%s5097_s4] sm:$0xff] %v2702_v9 }
 0x5e0 PF: > { %s5098_s0 = sld [smem:[#allocation4_spill]] }
 0x5e6   : > { %s31_s1 = sadd.s32 1, %s5098_s0  }
 0x5e7   : > { %p28_p7 = scmp.ge.s32.totalorder %s31_s1, 4  }
 0x5e9   :  { %30 = sbr.rel (!%p28_p7) target bundleno = 13 (0xd), region = 151 }

</bundles_post_ra>
